<compile_context>
chip_gen: v7x
topology: tpu7x:2x2x1
jax: 0.10.0
libtpu: 0.0.40
codegen_flags: <defaults>
</compile_context>

<pallas_src>
import functools
import math

import jax
import jax.numpy as jnp
from jax.experimental import pallas as pl
from jax.experimental.pallas import tpu as pltpu

COMPUTE_DTYPE = jnp.bfloat16          # MXU input dtype; accumulation stays float32.
TM_MAX = 1024                         # max M tile for the conv matmul kernels
BT_MAX = 64                           # max batch tile for the fused conv3+fc4+head kernel
VMEM_LIMIT = 32 * 1024 * 1024         # explicit scoped-VMEM budget (fits v5e/v6e/v7x)


def _round_up(x, m):
    return (x + m - 1) // m * m


def _choose_tile(m, tmax):
    """Row-tile chooser: prefer a multiple-of-16 divisor of m (no padding, >=2 grid steps so v7x
    can use both TensorCores); else a single full-extent block; else pad m up to tmax multiples."""
    t = (min(tmax, m // 2) // 16) * 16
    while t >= 16:
        if m % t == 0:
            return t, m
        t -= 16
    if m <= tmax:
        return m, m
    return tmax, _round_up(m, tmax)


# --------------------------------------------------------------------------------------
# Kernel 1: fused matmul + bias + ReLU, single K block (conv1 / conv2 im2col matmuls).
# --------------------------------------------------------------------------------------
def _mm_bias_relu_kernel(x_ref, w_ref, b_ref, o_ref):
    acc = jnp.dot(x_ref[...], w_ref[...], preferred_element_type=jnp.float32)
    o_ref[...] = jnp.maximum(acc + b_ref[...], 0.0).astype(o_ref.dtype)


def matmul_bias_relu(x, w, b, *, tm):
    """relu(x @ w + b). x:(Mp,K) bf16, w:(K,Np) bf16, b:(1,Np) f32 -> (Mp,Np) bf16."""
    Mp, K = x.shape
    K2, Np = w.shape
    assert K == K2 and Mp % tm == 0 and b.shape == (1, Np)
    cost = pl.CostEstimate(
        flops=int(2 * Mp * K * Np), transcendentals=0,
        bytes_accessed=int(Mp * K * 2 + K * Np * 2 + Np * 4 + Mp * Np * 2))
    return pl.pallas_call(
        _mm_bias_relu_kernel,
        out_shape=jax.ShapeDtypeStruct((Mp, Np), COMPUTE_DTYPE),
        grid_spec=pltpu.PrefetchScalarGridSpec(
            num_scalar_prefetch=0,
            grid=(Mp // tm,),
            in_specs=[
                pl.BlockSpec((tm, K), lambda m: (m, 0)),
                pl.BlockSpec((K, Np), lambda m: (0, 0)),    # constant index -> VMEM resident
                pl.BlockSpec((1, Np), lambda m: (0, 0)),
            ],
            out_specs=pl.BlockSpec((tm, Np), lambda m: (m, 0)),
        ),
        compiler_params=pltpu.CompilerParams(
            dimension_semantics=("parallel",), vmem_limit_bytes=VMEM_LIMIT),
        cost_estimate=cost,
    )(x, w, b)


# --------------------------------------------------------------------------------------
# Kernel 2: fused conv3 (3x3, stride 1) + fc4 (3136->512, ReLU) + head (512->A).
#   Input: conv3 patches arranged position-major (P=49, B, 576).  Grid over batch tiles.
#   Loop over the 49 output positions: conv3 matmul + bias + ReLU, accumulate the
#   position-specific (64,512) fc4 slab into a resident f32 hidden; epilogue = ReLU + head.
#   w3/w4/w5 have constant index maps (stay resident); the conv3 activation, the flattened
#   feature vector and the 512-wide hidden never touch HBM.
# --------------------------------------------------------------------------------------
def _conv3_fc4_head_kernel(p3_ref, w3_ref, b3_ref, w4_ref, b4_ref, w5_ref, b5_ref,
                           o_ref, h_ref):
    h_ref[...] = jnp.zeros_like(h_ref)

    def tap(p, carry):
        xp = p3_ref[p]                                               # (bt, 576) bf16
        c3 = jnp.dot(xp, w3_ref[...], preferred_element_type=jnp.float32)
        c3 = jnp.maximum(c3 + b3_ref[...], 0.0).astype(COMPUTE_DTYPE)  # (bt, 64)
        h_ref[...] += jnp.dot(c3, w4_ref[p], preferred_element_type=jnp.float32)
        return carry

    jax.lax.fori_loop(0, p3_ref.shape[0], tap, 0)
    h = jnp.maximum(h_ref[...] + b4_ref[...], 0.0).astype(COMPUTE_DTYPE)   # (bt, 512)
    o_ref[...] = jnp.dot(h, w5_ref[...], preferred_element_type=jnp.float32) + b5_ref[...]


def conv3_fc4_head(p3, w3, b3, w4, b4, w5, b5, *, bt):
    """head(relu(fc4(relu(conv3)))) in one pallas_call.
       p3:(P,Bp,576) bf16, w3:(576,64), w4:(P,64,512), w5:(512,128) -> (Bp,128) f32."""
    P, Bp, K3 = p3.shape
    C3 = w3.shape[1]
    H = w4.shape[2]
    Np = w5.shape[1]
    assert Bp % bt == 0 and w3.shape == (K3, C3) and w4.shape == (P, C3, H)
    flops = 2 * Bp * P * (K3 * C3 + C3 * H) + 2 * Bp * H * Np
    bytes_accessed = (p3.size * 2 + w3.size * 2 + w4.size * 2 + w5.size * 2
                      + (b3.size + b4.size + b5.size) * 4 + Bp * Np * 4)
    cost = pl.CostEstimate(flops=int(flops), transcendentals=0,
                           bytes_accessed=int(bytes_accessed))
    return pl.pallas_call(
        _conv3_fc4_head_kernel,
        out_shape=jax.ShapeDtypeStruct((Bp, Np), jnp.float32),
        grid_spec=pltpu.PrefetchScalarGridSpec(
            num_scalar_prefetch=0,
            grid=(Bp // bt,),
            in_specs=[
                pl.BlockSpec((P, bt, K3), lambda m: (0, m, 0)),
                pl.BlockSpec((K3, C3), lambda m: (0, 0)),
                pl.BlockSpec((1, C3), lambda m: (0, 0)),
                pl.BlockSpec((P, C3, H), lambda m: (0, 0, 0)),
                pl.BlockSpec((1, H), lambda m: (0, 0)),
                pl.BlockSpec((H, Np), lambda m: (0, 0)),
                pl.BlockSpec((1, Np), lambda m: (0, 0)),
            ],
            out_specs=pl.BlockSpec((bt, Np), lambda m: (m, 0)),
            scratch_shapes=[pltpu.VMEM((bt, H), jnp.float32)],
        ),
        compiler_params=pltpu.CompilerParams(
            dimension_semantics=("parallel",), vmem_limit_bytes=VMEM_LIMIT),
        cost_estimate=cost,
    )(p3, w3, b3, w4, b4, w5, b5)


# --------------------------------------------------------------------------------------
# Conv2d (valid padding) = one NHWC patch-extraction op + the Pallas matmul kernel.
# --------------------------------------------------------------------------------------
def _conv_patches(x_nhwc, kh, kw, stride):
    """(B,H,W,C) -> (B,Ho,Wo,C*kh*kw), feature order (c, i, j)."""
    return jax.lax.conv_general_dilated_patches(
        x_nhwc, filter_shape=(kh, kw), window_strides=(stride, stride),
        padding="VALID", dimension_numbers=("NHWC", "HWIO", "NHWC"))


def conv2d_relu(x_nhwc, wp, bp, *, kh, kw, stride, cout):
    """Conv2d(valid, stride) + ReLU with kernel-ready (K,128) bf16 / (1,128) f32 params.
       Returns NHWC bf16 activations (B, Ho, Wo, cout)."""
    B = x_nhwc.shape[0]
    p = _conv_patches(x_nhwc, kh, kw, stride)
    _, Ho, Wo, K = p.shape
    M = B * Ho * Wo
    p = p.reshape(M, K)
    tm, Mp = _choose_tile(M, TM_MAX)
    if Mp != M:
        p = jnp.pad(p, ((0, Mp - M), (0, 0)))
    out = matmul_bias_relu(p, wp, bp, tm=tm)           # (Mp, 128) bf16, lane-dense stores
    return out[:M, :cout].reshape(B, Ho, Wo, cout)


# --------------------------------------------------------------------------------------
# Parameters: PyTorch-layout init + one-time conversion to kernel-ready layout.
# --------------------------------------------------------------------------------------
def init_torch_params(key, state_dim, action_dim):
    """PyTorch-layout params (Conv2d (Cout,Cin,kh,kw); Linear (out,in)), default init bounds."""
    def u(k, shape, fan_in):
        b = 1.0 / math.sqrt(fan_in)
        return jax.random.uniform(k, shape, jnp.float32, -b, b)
    ks = jax.random.split(key, 10)
    return {
        "conv1.weight": u(ks[0], (32, state_dim, 8, 8), state_dim * 8 * 8),
        "conv1.bias":   u(ks[1], (32,), state_dim * 8 * 8),
        "conv2.weight": u(ks[2], (64, 32, 4, 4), 32 * 4 * 4),
        "conv2.bias":   u(ks[3], (64,), 32 * 4 * 4),
        "conv3.weight": u(ks[4], (64, 64, 3, 3), 64 * 3 * 3),
        "conv3.bias":   u(ks[5], (64,), 64 * 3 * 3),
        "fc4.weight":   u(ks[6], (512, 7 * 7 * 64), 7 * 7 * 64),
        "fc4.bias":     u(ks[7], (512,), 7 * 7 * 64),
        "head.weight":  u(ks[8], (action_dim, 512), 512),
        "head.bias":    u(ks[9], (action_dim,), 512),
    }


def prepare_params(tp):
    """One-time layout prep: matmul-ready bf16 weights / f32 bias rows, with the conv (c,i,j)
       patch order, the fc4 NCHW-flatten and the per-position fc4 slab split folded in."""
    def conv_w_padded(w):                     # conv1/conv2: (cout,cin,kh,kw) -> (K, 128) bf16
        cout, cin, kh, kw = w.shape
        m = jnp.transpose(w, (1, 2, 3, 0)).reshape(cin * kh * kw, cout)   # rows = (c, i, j)
        return jnp.pad(m, ((0, 0), (0, 128 - cout))).astype(COMPUTE_DTYPE)

    def bias_row(b, n):
        return jnp.pad(b, (0, n - b.shape[0])).reshape(1, n).astype(jnp.float32)

    p = {
        "w1": conv_w_padded(tp["conv1.weight"]), "b1": bias_row(tp["conv1.bias"], 128),
        "w2": conv_w_padded(tp["conv2.weight"]), "b2": bias_row(tp["conv2.bias"], 128),
    }
    # conv3: kept at its true 64 output channels (output never hits HBM in the fused tail).
    w3 = jnp.transpose(tp["conv3.weight"], (1, 2, 3, 0)).reshape(64 * 3 * 3, 64)
    p["w3"] = w3.astype(COMPUTE_DTYPE)
    p["b3"] = tp["conv3.bias"].reshape(1, 64).astype(jnp.float32)
    # fc4: per-output-position slabs. PyTorch flatten is NCHW (c,h,w); slab[p][c,:] = W4[:, c*49+p].
    w4 = tp["fc4.weight"].reshape(512, 64, 7, 7).transpose(2, 3, 1, 0).reshape(49, 64, 512)
    p["w4"] = w4.astype(COMPUTE_DTYPE)
    p["b4"] = tp["fc4.bias"].reshape(1, 512).astype(jnp.float32)
    # head
    w5 = tp["head.weight"].T                                    # (512, action_dim)
    nph = _round_up(w5.shape[1], 128)
    p["w5"] = jnp.pad(w5, ((0, 0), (0, nph - w5.shape[1]))).astype(COMPUTE_DTYPE)
    p["b5"] = bias_row(tp["head.bias"], nph)
    return p


# --------------------------------------------------------------------------------------
# Forward pass (matches ConvolutionalQnet.forward's intended semantics).
# --------------------------------------------------------------------------------------
@functools.partial(jax.jit, static_argnames=("action_dim",))
def convolutional_qnet_forward(params, x_nchw, *, action_dim):
    B = x_nchw.shape[0]
    # One up-front NCHW->NHWC transpose fused with the bf16 cast; NHWC everywhere after.
    x = jnp.transpose(x_nchw, (0, 2, 3, 1)).astype(COMPUTE_DTYPE)
    x = conv2d_relu(x, params["w1"], params["b1"], kh=8, kw=8, stride=4, cout=32)
    x = conv2d_relu(x, params["w2"], params["b2"], kh=4, kw=4, stride=2, cout=64)
    # conv3 + fc4 + head fused: patches arranged position-major (P=49, B, 576).
    p3 = _conv_patches(x, 3, 3, 1)                               # (B, 7, 7, 576)
    P = p3.shape[1] * p3.shape[2]
    p3 = p3.reshape(B, P, p3.shape[3]).transpose(1, 0, 2)        # (P, B, 576)
    bt, bp = _choose_tile(B, BT_MAX)
    if bp != B:
        p3 = jnp.pad(p3, ((0, 0), (0, bp - B), (0, 0)))
    q = conv3_fc4_head(p3, params["w3"], params["b3"], params["w4"],
                       params["b4"], params["w5"], params["b5"], bt=bt)   # (bp, 128) f32
    return q[:B, :action_dim]


# --------------------------------------------------------------------------------------
# Pure-JAX float32 reference (intended semantics: NCHW flatten before fc4).
# --------------------------------------------------------------------------------------
def reference_forward(tp, x):
    def conv(x, w, b, s):
        y = jax.lax.conv_general_dilated(
            x, w, window_strides=(s, s), padding="VALID",
            dimension_numbers=("NCHW", "OIHW", "NCHW"))
        return jax.nn.relu(y + b.reshape(1, -1, 1, 1))
    x = conv(x, tp["conv1.weight"], tp["conv1.bias"], 4)
    x = conv(x, tp["conv2.weight"], tp["conv2.bias"], 2)
    x = conv(x, tp["conv3.weight"], tp["conv3.bias"], 1)
    x = x.reshape(x.shape[0], -1)
    x = jax.nn.relu(x @ tp["fc4.weight"].T + tp["fc4.bias"])
    return x @ tp["head.weight"].T + tp["head.bias"]


if __name__ == "__main__":
    state_dim = 4        # stacked frames (input channels)
    action_dim = 6
    batch = 2
    spatial = 84         # required so the conv stack yields 7x7x64 = fc4 in_features

    key = jax.random.PRNGKey(0)
    k_params, k_x = jax.random.split(key)
    torch_params = init_torch_params(k_params, state_dim, action_dim)
    params = prepare_params(torch_params)     # one-time weight layout prep
    x = jax.random.normal(k_x, (batch, state_dim, spatial, spatial), jnp.float32)

    q = convolutional_qnet_forward(params, x, action_dim=action_dim)
    q = jax.block_until_ready(q)
    assert q.shape == (batch, action_dim), q.shape
    assert bool(jnp.all(jnp.isfinite(q)))

    # Validate against the float32 reference (bf16 activations/weights, f32 accumulation).
    ref = reference_forward(torch_params, x)
    err = float(jnp.max(jnp.abs(q - ref)))
    scale = float(jnp.max(jnp.abs(ref))) + 1e-6
    assert err <= 2e-2 + 8e-2 * scale, (err, scale)
    print("KERNEL_OK")
</pallas_src>

<mosaic_0001>
module attributes {stable_mosaic.version = 11 : i64} {
  func.func @_mm_bias_relu_kernel(%arg0: i32, %arg1: memref<400x256xbf16, #tpu.memory_space<vmem>>, %arg2: memref<256x128xbf16, #tpu.memory_space<vmem>>, %arg3: memref<1x128xf32, #tpu.memory_space<vmem>>, %arg4: memref<400x128xbf16, #tpu.memory_space<vmem>>) attributes {dimension_semantics = [#tpu.dimension_semantics<parallel>], iteration_bounds = array<i64: 2>, scalar_prefetch = 0 : i64, scratch_operands = 0 : i64, tpu.core_type = #tpu.core_type<tc>, window_params = [{transform_indices = @transform_0, window_bounds = array<i64: 400, 256>}, {pipeline_mode = #tpu.pipeline_mode<synchronous>, transform_indices = @transform_1, window_bounds = array<i64: 256, 128>}, {pipeline_mode = #tpu.pipeline_mode<synchronous>, transform_indices = @transform_2, window_bounds = array<i64: 1, 128>}, {transform_indices = @transform_3, window_bounds = array<i64: 400, 128>}]} {
    %c0 = arith.constant 0 : index
    %c0_0 = arith.constant 0 : index
    %0 = vector.load %arg1[%c0, %c0_0] : memref<400x256xbf16, #tpu.memory_space<vmem>>, vector<400x256xbf16>
    %c0_1 = arith.constant 0 : index
    %c0_2 = arith.constant 0 : index
    %1 = vector.load %arg2[%c0_1, %c0_2] : memref<256x128xbf16, #tpu.memory_space<vmem>>, vector<256x128xbf16>
    %cst = arith.constant dense<0.000000e+00> : vector<400x128xf32>
    %2 = tpu.matmul %0, %1, %cst {dimension_numbers = #tpu.dot_dimension_numbers<[1], [0], [0], [1], [0, 0, 1, 1], [], []>} : vector<400x256xbf16>, vector<256x128xbf16>, vector<400x128xf32> -> vector<400x128xf32>
    %c0_3 = arith.constant 0 : index
    %c0_4 = arith.constant 0 : index
    %3 = vector.load %arg3[%c0_3, %c0_4] : memref<1x128xf32, #tpu.memory_space<vmem>>, vector<1x128xf32>
    %4 = vector.broadcast %3 : vector<1x128xf32> to vector<400x128xf32>
    %5 = arith.addf %2, %4 : vector<400x128xf32>
    %cst_5 = arith.constant 0.000000e+00 : f32
    %6 = vector.broadcast %cst_5 : f32 to vector<400x128xf32>
    %7 = arith.maximumf %5, %6 : vector<400x128xf32>
    %8 = arith.truncf %7 : vector<400x128xf32> to vector<400x128xbf16>
    %c0_6 = arith.constant 0 : index
    %c0_7 = arith.constant 0 : index
    %9 = vector.load %arg4[%c0_6, %c0_7] : memref<400x128xbf16, #tpu.memory_space<vmem>>, vector<400x128xbf16>
    tpu.vector_store %arg4[%c0_6, %c0_7], %8 {strides = array<i32>} : memref<400x128xbf16, #tpu.memory_space<vmem>>, vector<400x128xbf16>,
    return
  }
  func.func @transform_0(%arg0: i32) -> (i32, i32) {
    %c0_i32 = arith.constant 0 : i32
    %c0_i32_0 = arith.constant 0 : i32
    return %arg0, %c0_i32 : i32, i32
  }
  func.func @transform_1(%arg0: i32) -> (i32, i32) {
    %c0_i32 = arith.constant 0 : i32
    %c0_i32_0 = arith.constant 0 : i32
    %c0_i32_1 = arith.constant 0 : i32
    return %c0_i32, %c0_i32_0 : i32, i32
  }
  func.func @transform_2(%arg0: i32) -> (i32, i32) {
    %c0_i32 = arith.constant 0 : i32
    %c0_i32_0 = arith.constant 0 : i32
    %c0_i32_1 = arith.constant 0 : i32
    return %c0_i32, %c0_i32_0 : i32, i32
  }
  func.func @transform_3(%arg0: i32) -> (i32, i32) {
    %c0_i32 = arith.constant 0 : i32
    %c0_i32_0 = arith.constant 0 : i32
    return %arg0, %c0_i32 : i32, i32
  }
}

module attributes {stable_mosaic.version = 11 : i64} {
  func.func @_mm_bias_relu_kernel(%arg0: i32, %arg1: memref<162x512xbf16, #tpu.memory_space<vmem>>, %arg2: memref<512x128xbf16, #tpu.memory_space<vmem>>, %arg3: memref<1x128xf32, #tpu.memory_space<vmem>>, %arg4: memref<162x128xbf16, #tpu.memory_space<vmem>>) attributes {dimension_semantics = [#tpu.dimension_semantics<parallel>], iteration_bounds = array<i64: 1>, scalar_prefetch = 0 : i64, scratch_operands = 0 : i64, tpu.core_type = #tpu.core_type<tc>, window_params = [{transform_indices = @transform_0, window_bounds = array<i64: 162, 512>}, {pipeline_mode = #tpu.pipeline_mode<synchronous>, transform_indices = @transform_1, window_bounds = array<i64: 512, 128>}, {pipeline_mode = #tpu.pipeline_mode<synchronous>, transform_indices = @transform_2, window_bounds = array<i64: 1, 128>}, {transform_indices = @transform_3, window_bounds = array<i64: 162, 128>}]} {
    %c0 = arith.constant 0 : index
    %c0_0 = arith.constant 0 : index
    %0 = vector.load %arg1[%c0, %c0_0] : memref<162x512xbf16, #tpu.memory_space<vmem>>, vector<162x512xbf16>
    %c0_1 = arith.constant 0 : index
    %c0_2 = arith.constant 0 : index
    %1 = vector.load %arg2[%c0_1, %c0_2] : memref<512x128xbf16, #tpu.memory_space<vmem>>, vector<512x128xbf16>
    %cst = arith.constant dense<0.000000e+00> : vector<162x128xf32>
    %2 = tpu.matmul %0, %1, %cst {dimension_numbers = #tpu.dot_dimension_numbers<[1], [0], [0], [1], [0, 0, 1, 1], [], []>} : vector<162x512xbf16>, vector<512x128xbf16>, vector<162x128xf32> -> vector<162x128xf32>
    %c0_3 = arith.constant 0 : index
    %c0_4 = arith.constant 0 : index
    %3 = vector.load %arg3[%c0_3, %c0_4] : memref<1x128xf32, #tpu.memory_space<vmem>>, vector<1x128xf32>
    %4 = vector.broadcast %3 : vector<1x128xf32> to vector<162x128xf32>
    %5 = arith.addf %2, %4 : vector<162x128xf32>
    %cst_5 = arith.constant 0.000000e+00 : f32
    %6 = vector.broadcast %cst_5 : f32 to vector<162x128xf32>
    %7 = arith.maximumf %5, %6 : vector<162x128xf32>
    %8 = arith.truncf %7 : vector<162x128xf32> to vector<162x128xbf16>
    %c0_6 = arith.constant 0 : index
    %c0_7 = arith.constant 0 : index
    %9 = vector.load %arg4[%c0_6, %c0_7] : memref<162x128xbf16, #tpu.memory_space<vmem>>, vector<162x128xbf16>
    tpu.vector_store %arg4[%c0_6, %c0_7], %8 {strides = array<i32>} : memref<162x128xbf16, #tpu.memory_space<vmem>>, vector<162x128xbf16>,
    return
  }
  func.func @transform_0(%arg0: i32) -> (i32, i32) {
    %c0_i32 = arith.constant 0 : i32
    %c0_i32_0 = arith.constant 0 : i32
    return %arg0, %c0_i32 : i32, i32
  }
  func.func @transform_1(%arg0: i32) -> (i32, i32) {
    %c0_i32 = arith.constant 0 : i32
    %c0_i32_0 = arith.constant 0 : i32
    %c0_i32_1 = arith.constant 0 : i32
    return %c0_i32, %c0_i32_0 : i32, i32
  }
  func.func @transform_2(%arg0: i32) -> (i32, i32) {
    %c0_i32 = arith.constant 0 : i32
    %c0_i32_0 = arith.constant 0 : i32
    %c0_i32_1 = arith.constant 0 : i32
    return %c0_i32, %c0_i32_0 : i32, i32
  }
  func.func @transform_3(%arg0: i32) -> (i32, i32) {
    %c0_i32 = arith.constant 0 : i32
    %c0_i32_0 = arith.constant 0 : i32
    return %arg0, %c0_i32 : i32, i32
  }
}

module attributes {stable_mosaic.version = 11 : i64} {
  func.func @_conv3_fc4_head_kernel(%arg0: i32, %arg1: memref<49x2x576xbf16, #tpu.memory_space<vmem>>, %arg2: memref<576x64xbf16, #tpu.memory_space<vmem>>, %arg3: memref<1x64xf32, #tpu.memory_space<vmem>>, %arg4: memref<49x64x512xbf16, #tpu.memory_space<vmem>>, %arg5: memref<1x512xf32, #tpu.memory_space<vmem>>, %arg6: memref<512x128xbf16, #tpu.memory_space<vmem>>, %arg7: memref<1x128xf32, #tpu.memory_space<vmem>>, %arg8: memref<2x128xf32, #tpu.memory_space<vmem>>, %arg9: memref<2x512xf32, #tpu.memory_space<vmem>>) attributes {dimension_semantics = [#tpu.dimension_semantics<parallel>], iteration_bounds = array<i64: 1>, scalar_prefetch = 0 : i64, scratch_operands = 1 : i64, tpu.core_type = #tpu.core_type<tc>, window_params = [{transform_indices = @transform_0, window_bounds = array<i64: 49, 2, 576>}, {pipeline_mode = #tpu.pipeline_mode<synchronous>, transform_indices = @transform_1, window_bounds = array<i64: 576, 64>}, {pipeline_mode = #tpu.pipeline_mode<synchronous>, transform_indices = @transform_2, window_bounds = array<i64: 1, 64>}, {pipeline_mode = #tpu.pipeline_mode<synchronous>, transform_indices = @transform_3, window_bounds = array<i64: 49, 64, 512>}, {pipeline_mode = #tpu.pipeline_mode<synchronous>, transform_indices = @transform_4, window_bounds = array<i64: 1, 512>}, {pipeline_mode = #tpu.pipeline_mode<synchronous>, transform_indices = @transform_5, window_bounds = array<i64: 512, 128>}, {pipeline_mode = #tpu.pipeline_mode<synchronous>, transform_indices = @transform_6, window_bounds = array<i64: 1, 128>}, {transform_indices = @transform_7, window_bounds = array<i64: 2, 128>}]} {
    %cst = arith.constant 0.000000e+00 : f32
    %0 = vector.broadcast %cst : f32 to vector<2x512xf32>
    %c0 = arith.constant 0 : index
    %c0_0 = arith.constant 0 : index
    %1 = vector.load %arg9[%c0, %c0_0] : memref<2x512xf32, #tpu.memory_space<vmem>>, vector<2x512xf32>
    tpu.vector_store %arg9[%c0, %c0_0], %0 {strides = array<i32>} : memref<2x512xf32, #tpu.memory_space<vmem>>, vector<2x512xf32>,
    %c0_i32 = arith.constant 0 : i32
    %c49_i32 = arith.constant 49 : i32
    %2 = arith.addi %c0_i32, %c49_i32 : i32
    %c1_i32 = arith.constant 1 : i32
    scf.for %arg10 = %c0_i32 to %2 step %c1_i32  : i32 {
      %16 = arith.index_cast %arg10 : i32 to index
      %c0_14 = arith.constant 0 : index
      %c0_15 = arith.constant 0 : index
      %17 = vector.load %arg1[%16, %c0_14, %c0_15] : memref<49x2x576xbf16, #tpu.memory_space<vmem>>, vector<1x2x576xbf16>
      %18 = vector.shape_cast %17 : vector<1x2x576xbf16> to vector<2x576xbf16>
      %c0_16 = arith.constant 0 : index
      %c0_17 = arith.constant 0 : index
      %19 = vector.load %arg2[%c0_16, %c0_17] : memref<576x64xbf16, #tpu.memory_space<vmem>>, vector<576x64xbf16>
      %cst_18 = arith.constant dense<0.000000e+00> : vector<2x64xf32>
      %20 = tpu.matmul %18, %19, %cst_18 {dimension_numbers = #tpu.dot_dimension_numbers<[1], [0], [0], [1], [0, 0, 1, 1], [], []>} : vector<2x576xbf16>, vector<576x64xbf16>, vector<2x64xf32> -> vector<2x64xf32>
      %c0_19 = arith.constant 0 : index
      %c0_20 = arith.constant 0 : index
      %21 = vector.load %arg3[%c0_19, %c0_20] : memref<1x64xf32, #tpu.memory_space<vmem>>, vector<1x64xf32>
      %22 = vector.broadcast %21 : vector<1x64xf32> to vector<2x64xf32>
      %23 = arith.addf %20, %22 : vector<2x64xf32>
      %cst_21 = arith.constant 0.000000e+00 : f32
      %24 = vector.broadcast %cst_21 : f32 to vector<2x64xf32>
      %25 = arith.maximumf %23, %24 : vector<2x64xf32>
      %26 = arith.truncf %25 : vector<2x64xf32> to vector<2x64xbf16>
      %c0_22 = arith.constant 0 : index
      %c0_23 = arith.constant 0 : index
      %27 = vector.load %arg9[%c0_22, %c0_23] : memref<2x512xf32, #tpu.memory_space<vmem>>, vector<2x512xf32>
      %28 = arith.index_cast %arg10 : i32 to index
      %c0_24 = arith.constant 0 : index
      %c0_25 = arith.constant 0 : index
      %29 = vector.load %arg4[%28, %c0_24, %c0_25] : memref<49x64x512xbf16, #tpu.memory_space<vmem>>, vector<1x64x512xbf16>
      %30 = vector.shape_cast %29 : vector<1x64x512xbf16> to vector<64x512xbf16>
      %cst_26 = arith.constant dense<0.000000e+00> : vector<2x512xf32>
      %31 = tpu.matmul %26, %30, %cst_26 {dimension_numbers = #tpu.dot_dimension_numbers<[1], [0], [0], [1], [0, 0, 1, 1], [], []>} : vector<2x64xbf16>, vector<64x512xbf16>, vector<2x512xf32> -> vector<2x512xf32>
      %32 = arith.addf %27, %31 : vector<2x512xf32>
      %c0_27 = arith.constant 0 : index
      %c0_28 = arith.constant 0 : index
      %33 = vector.load %arg9[%c0_27, %c0_28] : memref<2x512xf32, #tpu.memory_space<vmem>>, vector<2x512xf32>
      tpu.vector_store %arg9[%c0_27, %c0_28], %32 {strides = array<i32>} : memref<2x512xf32, #tpu.memory_space<vmem>>, vector<2x512xf32>,
    }
    %c49_i32_1 = arith.constant 49 : i32
    %c0_2 = arith.constant 0 : index
    %c0_3 = arith.constant 0 : index
    %3 = vector.load %arg9[%c0_2, %c0_3] : memref<2x512xf32, #tpu.memory_space<vmem>>, vector<2x512xf32>
    %c0_4 = arith.constant 0 : index
    %c0_5 = arith.constant 0 : index
    %4 = vector.load %arg5[%c0_4, %c0_5] : memref<1x512xf32, #tpu.memory_space<vmem>>, vector<1x512xf32>
    %5 = vector.broadcast %4 : vector<1x512xf32> to vector<2x512xf32>
    %6 = arith.addf %3, %5 : vector<2x512xf32>
    %cst_6 = arith.constant 0.000000e+00 : f32
    %7 = vector.broadcast %cst_6 : f32 to vector<2x512xf32>
    %8 = arith.maximumf %6, %7 : vector<2x512xf32>
    %9 = arith.truncf %8 : vector<2x512xf32> to vector<2x512xbf16>
    %c0_7 = arith.constant 0 : index
    %c0_8 = arith.constant 0 : index
    %10 = vector.load %arg6[%c0_7, %c0_8] : memref<512x128xbf16, #tpu.memory_space<vmem>>, vector<512x128xbf16>
    %cst_9 = arith.constant dense<0.000000e+00> : vector<2x128xf32>
    %11 = tpu.matmul %9, %10, %cst_9 {dimension_numbers = #tpu.dot_dimension_numbers<[1], [0], [0], [1], [0, 0, 1, 1], [], []>} : vector<2x512xbf16>, vector<512x128xbf16>, vector<2x128xf32> -> vector<2x128xf32>
    %c0_10 = arith.constant 0 : index
    %c0_11 = arith.constant 0 : index
    %12 = vector.load %arg7[%c0_10, %c0_11] : memref<1x128xf32, #tpu.memory_space<vmem>>, vector<1x128xf32>
    %13 = vector.broadcast %12 : vector<1x128xf32> to vector<2x128xf32>
    %14 = arith.addf %11, %13 : vector<2x128xf32>
    %c0_12 = arith.constant 0 : index
    %c0_13 = arith.constant 0 : index
    %15 = vector.load %arg8[%c0_12, %c0_13] : memref<2x128xf32, #tpu.memory_space<vmem>>, vector<2x128xf32>
    tpu.vector_store %arg8[%c0_12, %c0_13], %14 {strides = array<i32>} : memref<2x128xf32, #tpu.memory_space<vmem>>, vector<2x128xf32>,
    return
  }
  func.func @transform_0(%arg0: i32) -> (i32, i32, i32) {
    %c0_i32 = arith.constant 0 : i32
    %c0_i32_0 = arith.constant 0 : i32
    %c0_i32_1 = arith.constant 0 : i32
    return %c0_i32, %arg0, %c0_i32_0 : i32, i32, i32
  }
  func.func @transform_1(%arg0: i32) -> (i32, i32) {
    %c0_i32 = arith.constant 0 : i32
    %c0_i32_0 = arith.constant 0 : i32
    %c0_i32_1 = arith.constant 0 : i32
    return %c0_i32, %c0_i32_0 : i32, i32
  }
  func.func @transform_2(%arg0: i32) -> (i32, i32) {
    %c0_i32 = arith.constant 0 : i32
    %c0_i32_0 = arith.constant 0 : i32
    %c0_i32_1 = arith.constant 0 : i32
    return %c0_i32, %c0_i32_0 : i32, i32
  }
  func.func @transform_3(%arg0: i32) -> (i32, i32, i32) {
    %c0_i32 = arith.constant 0 : i32
    %c0_i32_0 = arith.constant 0 : i32
    %c0_i32_1 = arith.constant 0 : i32
    %c0_i32_2 = arith.constant 0 : i32
    return %c0_i32, %c0_i32_0, %c0_i32_1 : i32, i32, i32
  }
  func.func @transform_4(%arg0: i32) -> (i32, i32) {
    %c0_i32 = arith.constant 0 : i32
    %c0_i32_0 = arith.constant 0 : i32
    %c0_i32_1 = arith.constant 0 : i32
    return %c0_i32, %c0_i32_0 : i32, i32
  }
  func.func @transform_5(%arg0: i32) -> (i32, i32) {
    %c0_i32 = arith.constant 0 : i32
    %c0_i32_0 = arith.constant 0 : i32
    %c0_i32_1 = arith.constant 0 : i32
    return %c0_i32, %c0_i32_0 : i32, i32
  }
  func.func @transform_6(%arg0: i32) -> (i32, i32) {
    %c0_i32 = arith.constant 0 : i32
    %c0_i32_0 = arith.constant 0 : i32
    %c0_i32_1 = arith.constant 0 : i32
    return %c0_i32, %c0_i32_0 : i32, i32
  }
  func.func @transform_7(%arg0: i32) -> (i32, i32) {
    %c0_i32 = arith.constant 0 : i32
    %c0_i32_0 = arith.constant 0 : i32
    return %arg0, %c0_i32 : i32, i32
  }
}

</mosaic_0001>

<bundles_post_ra>
// kernel: convolutional_qnet_forward.3
= control target key start
LH: loop header
LB: loop body
LE: loop exit
PB: predicated region body
PF: predicated region fallthrough
CT: control target
= control target key end

     0   :  { %s1690_s12 = smov 0   ;;  %s1925_s0 = inlined_call_operand.vmem [shape: bf16[800,256], index: 0, kind: input, shape index: {}]   ;;  %s1926_s1 = inlined_call_operand.vmem [shape: bf16[256,128], index: 1, kind: input, shape index: {}]   ;;  %s1927_s2 = inlined_call_operand.vmem [shape: f32[1,128], index: 2, kind: input, shape index: {}]   ;;  %s1928_s3 = inlined_call_operand.vmem [shape: bf16[800,128], index: 3, kind: output, shape index: {}]  }
   0x1 LB: > { %s1202_s13 = sadd.s32 4294967295, %s1667_s12   ;;  %p1206_p0 = scmp.ge.s32.totalorder %s1667_s12, 1  ;;  %s1667_s12 = sphi %s1690_s12, %s13_s12  }
   0x2   : > { %p139_p1 = scmp.lt.s32.totalorder %s1667_s12, 3 }
   0x4   : > { %p140_p2 = pnand %p1206_p0, %p139_p1 }
   0x5   : > { %v1570_v0 = vld [vmem:[%s1926_s1] sm:$0xff] (!%p140_p2)   ;;  %v1669_v1 = vmov (!%p140_p2), 0   ;;  %s164_s16 = smul.u32 (!%p140_p2), 50, %s1202_s13  ;;  %v1571_v2 = vld [vmem:[%s1926_s1 + $0x8] sm:$0xff] (!%p140_p2)   ;;  %v1572_v3 = vld [vmem:[%s1926_s1 + $0x10] sm:$0xff] (!%p140_p2)  }
   0x6   : > { %143 = sbr.rel (%p140_p2) target bundleno = 387 (0x183), region = 32  ;;  %613 = vmatprep.subr.bf16.mxu0 (!%p140_p2), %v1669_v1  ;;  %1529 = vmatprep.subr.bf16.mxu1 (!%p140_p2), %v1669_v1  ;;  %v1573_v4 = vld [vmem:[%s1926_s1 + $0x18] sm:$0xff] (!%p140_p2)   ;;  %v1574_v5 = vld [vmem:[%s1926_s1 + $0x20] sm:$0xff] (!%p140_p2)   ;;  %v1575_v7 = vld [vmem:[%s1926_s1 + $0x28] sm:$0xff] (!%p140_p2)  }
   0x7   : > { %614 = vmatpush1.bf16.msra.mxu0 (!%p140_p2), %v1570_v0  ;;  %1545 = vmatpush1.bf16.msra.mxu1 (!%p140_p2), %v1570_v0  ;;  %p165_p3 = scmp.lt.s32.totalorder (!%p140_p2), %s164_s16, 99  ;;  %v1576_v9 = vld [vmem:[%s1926_s1 + $0x30] sm:$0xff] (!%p140_p2)   ;;  %v1577_v10 = vld [vmem:[%s1926_s1 + $0x38] sm:$0xff] (!%p140_p2)   ;;  %v1578_v11 = vld [vmem:[%s1926_s1 + $0x40] sm:$0xff] (!%p140_p2)  }
   0x8   : > { %615 = vmatprep.subr.bf16.mxu0 (!%p140_p2), %v1669_v1  ;;  %1530 = vmatprep.subr.bf16.mxu1 (!%p140_p2), %v1669_v1  ;;  %v1579_v12 = vld [vmem:[%s1926_s1 + $0x48] sm:$0xff] (!%p140_p2)   ;;  %v1580_v13 = vld [vmem:[%s1926_s1 + $0x50] sm:$0xff] (!%p140_p2)   ;;  %v1581_v14 = vld [vmem:[%s1926_s1 + $0x58] sm:$0xff] (!%p140_p2)  }
   0x9   : > { %v1582_v15 = vld [vmem:[%s1926_s1 + $0x60] sm:$0xff] (!%p140_p2)   ;;  %v1583_v16 = vld [vmem:[%s1926_s1 + $0x68] sm:$0xff] (!%p140_p2)   ;;  %v1584_v17 = vld [vmem:[%s1926_s1 + $0x70] sm:$0xff] (!%p140_p2)  }
   0xa   : > { %v1585_v18 = vld [vmem:[%s1926_s1 + $0x78] sm:$0xff] (!%p140_p2)  }
   0xb   : > { %616 = vmatpush1.bf16.msra.mxu0 (!%p140_p2), %v1571_v2  ;;  %1546 = vmatpush1.bf16.msra.mxu1 (!%p140_p2), %v1571_v2 }
   0xc   : > { %617 = vmatprep.subr.bf16.mxu0 (!%p140_p2), %v1669_v1  ;;  %1531 = vmatprep.subr.bf16.mxu1 (!%p140_p2), %v1669_v1 }
   0xd   : > { %s1930_s16 = smov (!%p165_p3, %s164_s16), 99 }
   0xe   : > { %s1329_s23 = sshll.u32 %s1930_s16, 3  ;;  %s1209_s29 = sshll.u32 %s1930_s16, 2 }
   0xf   : > { %618 = vmatpush1.bf16.msra.mxu0 %v1572_v3  ;;  %1547 = vmatpush1.bf16.msra.mxu1 %v1572_v3  ;;  %s1727_s28 = scalar_lea.vmem %s1925_s0, %s1329_s23  ;;  %v1839_v3 = vld [vmem:[%s1927_s2] ss:$0 sm:$0xff]  ;;  %s1849_s4 = scalar_lea.vmem %s1928_s3, %s1209_s29 }
  0x10   : > { %619 = vmatprep.subr.bf16.mxu0 %v1669_v1  ;;  %1532 = vmatprep.subr.bf16.mxu1 %v1669_v1  ;;  %v1588_v6 = vld [vmem:[%s1727_s28 + $0x4] ss:$8 sps:$4 sm:$0xff]   ;;  %v1591_v8 = vld [vmem:[%s1727_s28 + $0xd4] ss:$8 sps:$4 sm:$0xff]   ;;  %v1586_v19 = vld [vmem:[%s1727_s28] ss:$8 sps:$4 sm:$0xff]  }
  0x11   : > { %645 = vmatprep.mubr.bf16.mxu0 %v1588_v6  ;;  %749 = vmatprep.mubr.bf16.mxu1 %v1591_v8  ;;  %v1589_v20 = vld [vmem:[%s1727_s28 + $0xd0] ss:$8 sps:$4 sm:$0xff]   ;;  %v1592_v21 = vld [vmem:[%s1727_s28 + $0x14] ss:$8 sps:$4 sm:$0xff]   ;;  %v1595_v22 = vld [vmem:[%s1727_s28 + $0xe4] ss:$8 sps:$4 sm:$0xff]  }
  0x12   : > { %v1594_v23 = vld [vmem:[%s1727_s28 + $0x10] ss:$8 sps:$4 sm:$0xff]   ;;  %v1597_v24 = vld [vmem:[%s1727_s28 + $0xe0] ss:$8 sps:$4 sm:$0xff]   ;;  %v1598_v25 = vld [vmem:[%s1727_s28 + $0x24] ss:$8 sps:$4 sm:$0xff]  }
  0x13   : > { %620 = vmatpush1.bf16.msra.mxu0 %v1573_v4  ;;  %1548 = vmatpush1.bf16.msra.mxu1 %v1573_v4  ;;  %v1601_v26 = vld [vmem:[%s1727_s28 + $0xf4] ss:$8 sps:$4 sm:$0xff]   ;;  %v1600_v27 = vld [vmem:[%s1727_s28 + $0x20] ss:$8 sps:$4 sm:$0xff]   ;;  %v1603_v28 = vld [vmem:[%s1727_s28 + $0xf0] ss:$8 sps:$4 sm:$0xff]  }
  0x14   : > { %621 = vmatprep.subr.bf16.mxu0 %v1669_v1  ;;  %1533 = vmatprep.subr.bf16.mxu1 %v1669_v1  ;;  %v1604_v29 = vld [vmem:[%s1727_s28 + $0x34] ss:$8 sps:$4 sm:$0xff]   ;;  %v1607_v30 = vld [vmem:[%s1727_s28 + $0x104] ss:$8 sps:$4 sm:$0xff]   ;;  %v1606_v31 = vld [vmem:[%s1727_s28 + $0x30] ss:$8 sps:$4 sm:$0xff]  }
  0x15   : > { %v1609_v32 = vld [vmem:[%s1727_s28 + $0x100] ss:$8 sps:$4 sm:$0xff]   ;;  %v1610_v33 = vld [vmem:[%s1727_s28 + $0x44] ss:$8 sps:$4 sm:$0xff]   ;;  %v1613_v34 = vld [vmem:[%s1727_s28 + $0x114] ss:$8 sps:$4 sm:$0xff]  }
  0x16   : > { %v1612_v35 = vld [vmem:[%s1727_s28 + $0x40] ss:$8 sps:$4 sm:$0xff]   ;;  %v1615_v36 = vld [vmem:[%s1727_s28 + $0x110] ss:$8 sps:$4 sm:$0xff]   ;;  %v1616_v37 = vld [vmem:[%s1727_s28 + $0x54] ss:$8 sps:$4 sm:$0xff]  }
  0x17   : > { %622 = vmatpush1.bf16.msra.mxu0 %v1574_v5  ;;  %1549 = vmatpush1.bf16.msra.mxu1 %v1574_v5  ;;  %v1619_v38 = vld [vmem:[%s1727_s28 + $0x124] ss:$8 sps:$4 sm:$0xff]   ;;  %v1618_v39 = vld [vmem:[%s1727_s28 + $0x50] ss:$8 sps:$4 sm:$0xff]   ;;  %v1621_v40 = vld [vmem:[%s1727_s28 + $0x120] ss:$8 sps:$4 sm:$0xff]  }
  0x18   : > { %623 = vmatprep.subr.bf16.mxu0 %v1669_v1  ;;  %1534 = vmatprep.subr.bf16.mxu1 %v1669_v1  ;;  %v1622_v41 = vld [vmem:[%s1727_s28 + $0x64] ss:$8 sps:$4 sm:$0xff]   ;;  %v1625_v42 = vld [vmem:[%s1727_s28 + $0x134] ss:$8 sps:$4 sm:$0xff]   ;;  %v1624_v43 = vld [vmem:[%s1727_s28 + $0x60] ss:$8 sps:$4 sm:$0xff]  }
  0x19   : > { %v1627_v44 = vld [vmem:[%s1727_s28 + $0x130] ss:$8 sps:$4 sm:$0xff]   ;;  %v1628_v45 = vld [vmem:[%s1727_s28 + $0x74] ss:$8 sps:$4 sm:$0xff]   ;;  %v1631_v46 = vld [vmem:[%s1727_s28 + $0x144] ss:$8 sps:$4 sm:$0xff]  }
  0x1a   : > { %v1630_v47 = vld [vmem:[%s1727_s28 + $0x70] ss:$8 sps:$4 sm:$0xff]   ;;  %v1633_v48 = vld [vmem:[%s1727_s28 + $0x140] ss:$8 sps:$4 sm:$0xff]   ;;  %v1634_v49 = vld [vmem:[%s1727_s28 + $0x84] ss:$8 sps:$4 sm:$0xff]  }
  0x1b   : > { %624 = vmatpush1.bf16.msra.mxu0 %v1575_v7  ;;  %1550 = vmatpush1.bf16.msra.mxu1 %v1575_v7  ;;  %v1637_v50 = vld [vmem:[%s1727_s28 + $0x154] ss:$8 sps:$4 sm:$0xff]   ;;  %v1636_v51 = vld [vmem:[%s1727_s28 + $0x80] ss:$8 sps:$4 sm:$0xff]   ;;  %v1639_v52 = vld [vmem:[%s1727_s28 + $0x150] ss:$8 sps:$4 sm:$0xff]  }
  0x1c   : > { %625 = vmatprep.subr.bf16.mxu0 %v1669_v1  ;;  %1535 = vmatprep.subr.bf16.mxu1 %v1669_v1  ;;  %v1640_v53 = vld [vmem:[%s1727_s28 + $0x94] ss:$8 sps:$4 sm:$0xff]   ;;  %v1643_v54 = vld [vmem:[%s1727_s28 + $0x164] ss:$8 sps:$4 sm:$0xff]   ;;  %v1642_v55 = vld [vmem:[%s1727_s28 + $0x90] ss:$8 sps:$4 sm:$0xff]  }
  0x1d   : > { %v1645_v56 = vld [vmem:[%s1727_s28 + $0x160] ss:$8 sps:$4 sm:$0xff]   ;;  %v1646_v57 = vld [vmem:[%s1727_s28 + $0xa4] ss:$8 sps:$4 sm:$0xff]   ;;  %v1649_v58 = vld [vmem:[%s1727_s28 + $0x174] ss:$8 sps:$4 sm:$0xff]  }
  0x1e   : > { %v1648_v59 = vld [vmem:[%s1727_s28 + $0xa0] ss:$8 sps:$4 sm:$0xff]   ;;  %v1651_v60 = vld [vmem:[%s1727_s28 + $0x170] ss:$8 sps:$4 sm:$0xff]   ;;  %v1652_v61 = vld [vmem:[%s1727_s28 + $0xb4] ss:$8 sps:$4 sm:$0xff]  }
  0x1f   : > { %626 = vmatpush1.bf16.msra.mxu0 %v1576_v9  ;;  %1551 = vmatpush1.bf16.msra.mxu1 %v1576_v9  ;;  %v1655_v62 = vld [vmem:[%s1727_s28 + $0x184] ss:$8 sps:$4 sm:$0xff]   ;;  %v1654_v63 = vld [vmem:[%s1727_s28 + $0xb0] ss:$8 sps:$4 sm:$0xff]   ;;  %v1657_v0 = vld [vmem:[%s1727_s28 + $0x180] ss:$8 sps:$4 sm:$0xff]  }
  0x20   : > { %627 = vmatprep.subr.bf16.mxu0 %v1669_v1  ;;  %1536 = vmatprep.subr.bf16.mxu1 %v1669_v1  ;;  %v1660_v2 = vld [vmem:[%s1727_s28 + $0xc0] ss:$8 sps:$4 sm:$0xff]  }
  0x23   : > { %628 = vmatpush1.bf16.msra.mxu0 %v1577_v10  ;;  %1552 = vmatpush1.bf16.msra.mxu1 %v1577_v10 }
  0x24   : > { %629 = vmatprep.subr.bf16.mxu0 %v1669_v1  ;;  %1537 = vmatprep.subr.bf16.mxu1 %v1669_v1 }
  0x27   : > { %630 = vmatpush1.bf16.msra.mxu0 %v1578_v11  ;;  %1553 = vmatpush1.bf16.msra.mxu1 %v1578_v11 }
  0x28   : > { %631 = vmatprep.subr.bf16.mxu0 %v1669_v1  ;;  %1538 = vmatprep.subr.bf16.mxu1 %v1669_v1 }
  0x2b   : > { %632 = vmatpush1.bf16.msra.mxu0 %v1579_v12  ;;  %1554 = vmatpush1.bf16.msra.mxu1 %v1579_v12 }
  0x2c   : > { %633 = vmatprep.subr.bf16.mxu0 %v1669_v1  ;;  %1539 = vmatprep.subr.bf16.mxu1 %v1669_v1 }
  0x2f   : > { %634 = vmatpush1.bf16.msra.mxu0 %v1580_v13  ;;  %1555 = vmatpush1.bf16.msra.mxu1 %v1580_v13 }
  0x30   : > { %635 = vmatprep.subr.bf16.mxu0 %v1669_v1  ;;  %1540 = vmatprep.subr.bf16.mxu1 %v1669_v1 }
  0x33   : > { %636 = vmatpush1.bf16.msra.mxu0 %v1581_v14  ;;  %1556 = vmatpush1.bf16.msra.mxu1 %v1581_v14 }
  0x34   : > { %637 = vmatprep.subr.bf16.mxu0 %v1669_v1  ;;  %1541 = vmatprep.subr.bf16.mxu1 %v1669_v1 }
  0x37   : > { %638 = vmatpush1.bf16.msra.mxu0 %v1582_v15  ;;  %1557 = vmatpush1.bf16.msra.mxu1 %v1582_v15 }
  0x38   : > { %639 = vmatprep.subr.bf16.mxu0 %v1669_v1  ;;  %1542 = vmatprep.subr.bf16.mxu1 %v1669_v1 }
  0x3b   : > { %640 = vmatpush1.bf16.msra.mxu0 %v1583_v16  ;;  %1558 = vmatpush1.bf16.msra.mxu1 %v1583_v16 }
  0x3c   : > { %641 = vmatprep.subr.bf16.mxu0 %v1669_v1  ;;  %1543 = vmatprep.subr.bf16.mxu1 %v1669_v1 }
  0x3f   : > { %642 = vmatpush1.bf16.msra.mxu0 %v1584_v17  ;;  %1559 = vmatpush1.bf16.msra.mxu1 %v1584_v17 }
  0x40   : > { %643 = vmatprep.subr.bf16.mxu0 %v1669_v1  ;;  %1544 = vmatprep.subr.bf16.mxu1 %v1669_v1  ;;  %v1658_v1 = vld [vmem:[%s1727_s28 + $0xc4] ss:$8 sps:$4 sm:$0xff]  }
  0x43   : > { %644 = vmatpush1.bf16.msra.mxu0 %v1585_v18  ;;  %1560 = vmatpush1.bf16.msra.mxu1 %v1585_v18 }
  0x46   : > { %646 = vmatmul.mubr.bf16.vlgmr.msra.gmra.mrb[0].mxu0 %v1586_v19  ;;  %750 = vmatmul.mubr.bf16.vlgmr.msra.gmra.mrb[0].mxu1 %v1589_v20 }
  0x47   : > { %653 = vmatprep.mubr.bf16.mxu0 %v1592_v21  ;;  %757 = vmatprep.mubr.bf16.mxu1 %v1595_v22 }
  0x4e   : > { %654 = vmatmul.mubr.bf16.gmra.mrb[4].mxu0 %v1594_v23  ;;  %758 = vmatmul.mubr.bf16.gmra.mrb[4].mxu1 %v1597_v24 }
  0x4f   : > { %661 = vmatprep.mubr.bf16.mxu0 %v1598_v25  ;;  %765 = vmatprep.mubr.bf16.mxu1 %v1601_v26 }
  0x56   : > { %662 = vmatmul.mubr.bf16.gmra.mrb[8].mxu0 %v1600_v27  ;;  %766 = vmatmul.mubr.bf16.gmra.mrb[8].mxu1 %v1603_v28 }
  0x57   : > { %669 = vmatprep.mubr.bf16.mxu0 %v1604_v29  ;;  %773 = vmatprep.mubr.bf16.mxu1 %v1607_v30 }
  0x5e   : > { %670 = vmatmul.mubr.bf16.gmra.mrb[12].mxu0 %v1606_v31  ;;  %774 = vmatmul.mubr.bf16.gmra.mrb[12].mxu1 %v1609_v32 }
  0x5f   : > { %677 = vmatprep.mubr.bf16.mxu0 %v1610_v33  ;;  %781 = vmatprep.mubr.bf16.mxu1 %v1613_v34 }
  0x66   : > { %678 = vmatmul.mubr.bf16.gmra.mrb[16].mxu0 %v1612_v35  ;;  %782 = vmatmul.mubr.bf16.gmra.mrb[16].mxu1 %v1615_v36 }
  0x67   : > { %685 = vmatprep.mubr.bf16.mxu0 %v1616_v37  ;;  %789 = vmatprep.mubr.bf16.mxu1 %v1619_v38 }
  0x6e   : > { %686 = vmatmul.mubr.bf16.gmra.mrb[20].mxu0 %v1618_v39  ;;  %790 = vmatmul.mubr.bf16.gmra.mrb[20].mxu1 %v1621_v40 }
  0x6f   : > { %693 = vmatprep.mubr.bf16.mxu0 %v1622_v41  ;;  %797 = vmatprep.mubr.bf16.mxu1 %v1625_v42 }
  0x76   : > { %694 = vmatmul.mubr.bf16.gmra.mrb[24].mxu0 %v1624_v43  ;;  %798 = vmatmul.mubr.bf16.gmra.mrb[24].mxu1 %v1627_v44 }
  0x77   : > { %701 = vmatprep.mubr.bf16.mxu0 %v1628_v45  ;;  %805 = vmatprep.mubr.bf16.mxu1 %v1631_v46 }
  0x7e   : > { %702 = vmatmul.mubr.bf16.gmra.mrb[28].mxu0 %v1630_v47  ;;  %806 = vmatmul.mubr.bf16.gmra.mrb[28].mxu1 %v1633_v48 }
  0x7f   : > { %709 = vmatprep.mubr.bf16.mxu0 %v1634_v49  ;;  %813 = vmatprep.mubr.bf16.mxu1 %v1637_v50 }
  0x86   : > { %710 = vmatmul.mubr.bf16.gmra.mrb[32].mxu0 %v1636_v51  ;;  %814 = vmatmul.mubr.bf16.gmra.mrb[32].mxu1 %v1639_v52 }
  0x87   : > { %717 = vmatprep.mubr.bf16.mxu0 %v1640_v53  ;;  %821 = vmatprep.mubr.bf16.mxu1 %v1643_v54 }
  0x8e   : > { %718 = vmatmul.mubr.bf16.gmra.mrb[36].mxu0 %v1642_v55  ;;  %822 = vmatmul.mubr.bf16.gmra.mrb[36].mxu1 %v1645_v56 }
  0x8f   : > { %725 = vmatprep.mubr.bf16.mxu0 %v1646_v57  ;;  %829 = vmatprep.mubr.bf16.mxu1 %v1649_v58 }
  0x96   : > { %726 = vmatmul.mubr.bf16.gmra.mrb[40].mxu0 %v1648_v59  ;;  %830 = vmatmul.mubr.bf16.gmra.mrb[40].mxu1 %v1651_v60 }
  0x97   : > { %733 = vmatprep.mubr.bf16.mxu0 %v1652_v61  ;;  %837 = vmatprep.mubr.bf16.mxu1 %v1655_v62 }
  0x9e   : > { %734 = vmatmul.mubr.bf16.gmra.mrb[44].mxu0 %v1654_v63  ;;  %838 = vmatmul.mubr.bf16.gmra.mrb[44].mxu1 %v1657_v0 }
  0x9f   : > { %741 = vmatprep.mubr.bf16.mxu0 %v1658_v1 }
  0xa6   : > { %742 = vmatmul.mubr.bf16.gmra.mrb[48].mxu0 %v1660_v2 }
 0x119   : > { %v647_v4 = vpop.f32.mrb[0].mxu0  ;;  %v751_v5 = vpop.f32.mrb[0].mxu1 }
 0x11a   : > { %v648_v6 = vadd.f32 %v1839_v3, %v647_v4  ;;  %v649_v7 = vpop.f32.mrb[1].mxu0  ;;  %v752_v8 = vadd.f32 %v1839_v3, %v751_v5  ;;  %v753_v9 = vpop.f32.mrb[1].mxu1 }
 0x11b   : > { %v650_v10 = vpop.f32.mrb[2].mxu0  ;;  %v754_v11 = vpop.f32.mrb[2].mxu1 }
 0x11c   : > { %v651_v12 = vadd.f32 %v1839_v3, %v650_v10  ;;  %v652_v13 = vpop.f32.mrb[3].mxu0  ;;  %v872_v14 = vmax.f32 %v752_v8, 0.0  ;;  %v755_v15 = vadd.f32 %v1839_v3, %v754_v11  ;;  %v756_v16 = vpop.f32.mrb[3].mxu1  ;;  %v846_v17 = vmax.f32 %v648_v6, 0.0 }
 0x11e   : > { %v847_v18 = vmax.f32 %v651_v12, 0.0  ;;  %v873_v19 = vmax.f32 %v755_v15, 0.0 }
 0x120   : > { %v1383_v20 = vpack.c.bf16 %v847_v18, %v846_v17  ;;  %v1448_v21 = vpack.c.bf16 %v873_v19, %v872_v14 }
 0x121   : > { %v655_v22 = vpop.f32.mrb[4].mxu0  ;;  %v759_v23 = vpop.f32.mrb[4].mxu1 }
 0x122   : > { %1384 = vst [vmem:[%s1849_s4] sm:$0xff] %v1383_v20   ;;  %1517 = vst [vmem:[%s1849_s4 + $0x68] sm:$0xff] %v1448_v21   ;;  %v656_v24 = vadd.f32 %v1839_v3, %v655_v22  ;;  %v657_v25 = vpop.f32.mrb[5].mxu0  ;;  %v760_v26 = vadd.f32 %v1839_v3, %v759_v23  ;;  %v761_v27 = vpop.f32.mrb[5].mxu1 }
 0x123   : > { %v658_v28 = vpop.f32.mrb[6].mxu0  ;;  %v762_v29 = vpop.f32.mrb[6].mxu1 }
 0x124   : > { %v659_v30 = vadd.f32 %v1839_v3, %v658_v28  ;;  %v660_v31 = vpop.f32.mrb[7].mxu0  ;;  %v874_v32 = vmax.f32 %v760_v26, 0.0  ;;  %v763_v33 = vadd.f32 %v1839_v3, %v762_v29  ;;  %v764_v34 = vpop.f32.mrb[7].mxu1  ;;  %v848_v35 = vmax.f32 %v656_v24, 0.0 }
 0x126   : > { %v849_v36 = vmax.f32 %v659_v30, 0.0  ;;  %v875_v37 = vmax.f32 %v763_v33, 0.0 }
 0x128   : > { %v1388_v38 = vpack.c.bf16 %v849_v36, %v848_v35  ;;  %v1453_v39 = vpack.c.bf16 %v875_v37, %v874_v32 }
 0x129   : > { %v663_v40 = vpop.f32.mrb[8].mxu0  ;;  %v767_v41 = vpop.f32.mrb[8].mxu1 }
 0x12a   : > { %1505 = vst [vmem:[%s1849_s4 + $0x8] sm:$0xff] %v1388_v38   ;;  %1518 = vst [vmem:[%s1849_s4 + $0x70] sm:$0xff] %v1453_v39   ;;  %v664_v42 = vadd.f32 %v1839_v3, %v663_v40  ;;  %v665_v43 = vpop.f32.mrb[9].mxu0  ;;  %v768_v44 = vadd.f32 %v1839_v3, %v767_v41  ;;  %v769_v45 = vpop.f32.mrb[9].mxu1 }
 0x12b   : > { %v666_v46 = vpop.f32.mrb[10].mxu0  ;;  %v770_v47 = vpop.f32.mrb[10].mxu1 }
 0x12c   : > { %v667_v48 = vadd.f32 %v1839_v3, %v666_v46  ;;  %v668_v49 = vpop.f32.mrb[11].mxu0  ;;  %v876_v50 = vmax.f32 %v768_v44, 0.0  ;;  %v771_v51 = vadd.f32 %v1839_v3, %v770_v47  ;;  %v772_v52 = vpop.f32.mrb[11].mxu1  ;;  %v850_v53 = vmax.f32 %v664_v42, 0.0 }
 0x12e   : > { %v851_v54 = vmax.f32 %v667_v48, 0.0  ;;  %v877_v55 = vmax.f32 %v771_v51, 0.0 }
 0x130   : > { %v1393_v56 = vpack.c.bf16 %v851_v54, %v850_v53  ;;  %v1458_v57 = vpack.c.bf16 %v877_v55, %v876_v50 }
 0x131   : > { %v671_v58 = vpop.f32.mrb[12].mxu0  ;;  %v775_v59 = vpop.f32.mrb[12].mxu1 }
 0x132   : > { %1506 = vst [vmem:[%s1849_s4 + $0x10] sm:$0xff] %v1393_v56   ;;  %1519 = vst [vmem:[%s1849_s4 + $0x78] sm:$0xff] %v1458_v57   ;;  %v672_v60 = vadd.f32 %v1839_v3, %v671_v58  ;;  %v673_v61 = vpop.f32.mrb[13].mxu0  ;;  %v776_v62 = vadd.f32 %v1839_v3, %v775_v59  ;;  %v777_v63 = vpop.f32.mrb[13].mxu1 }
 0x133   : > { %v674_v0 = vpop.f32.mrb[14].mxu0  ;;  %v778_v1 = vpop.f32.mrb[14].mxu1 }
 0x134   : > { %v675_v2 = vadd.f32 %v1839_v3, %v674_v0  ;;  %v676_v4 = vpop.f32.mrb[15].mxu0  ;;  %v878_v5 = vmax.f32 %v776_v62, 0.0  ;;  %v779_v6 = vadd.f32 %v1839_v3, %v778_v1  ;;  %v780_v7 = vpop.f32.mrb[15].mxu1  ;;  %v852_v8 = vmax.f32 %v672_v60, 0.0 }
 0x136   : > { %v853_v9 = vmax.f32 %v675_v2, 0.0  ;;  %v879_v10 = vmax.f32 %v779_v6, 0.0 }
 0x138   : > { %v1398_v11 = vpack.c.bf16 %v853_v9, %v852_v8  ;;  %v1463_v12 = vpack.c.bf16 %v879_v10, %v878_v5 }
 0x139   : > { %v679_v13 = vpop.f32.mrb[16].mxu0  ;;  %v783_v14 = vpop.f32.mrb[16].mxu1 }
 0x13a   : > { %1507 = vst [vmem:[%s1849_s4 + $0x18] sm:$0xff] %v1398_v11   ;;  %1520 = vst [vmem:[%s1849_s4 + $0x80] sm:$0xff] %v1463_v12   ;;  %v680_v15 = vadd.f32 %v1839_v3, %v679_v13  ;;  %v681_v16 = vpop.f32.mrb[17].mxu0  ;;  %v784_v17 = vadd.f32 %v1839_v3, %v783_v14  ;;  %v785_v18 = vpop.f32.mrb[17].mxu1 }
 0x13b   : > { %v682_v19 = vpop.f32.mrb[18].mxu0  ;;  %v786_v20 = vpop.f32.mrb[18].mxu1 }
 0x13c   : > { %v683_v21 = vadd.f32 %v1839_v3, %v682_v19  ;;  %v684_v22 = vpop.f32.mrb[19].mxu0  ;;  %v880_v23 = vmax.f32 %v784_v17, 0.0  ;;  %v787_v24 = vadd.f32 %v1839_v3, %v786_v20  ;;  %v788_v25 = vpop.f32.mrb[19].mxu1  ;;  %v854_v26 = vmax.f32 %v680_v15, 0.0 }
 0x13e   : > { %v855_v27 = vmax.f32 %v683_v21, 0.0  ;;  %v881_v28 = vmax.f32 %v787_v24, 0.0 }
 0x140   : > { %v1403_v29 = vpack.c.bf16 %v855_v27, %v854_v26  ;;  %v1468_v30 = vpack.c.bf16 %v881_v28, %v880_v23 }
 0x141   : > { %v687_v31 = vpop.f32.mrb[20].mxu0  ;;  %v791_v32 = vpop.f32.mrb[20].mxu1 }
 0x142   : > { %1508 = vst [vmem:[%s1849_s4 + $0x20] sm:$0xff] %v1403_v29   ;;  %1521 = vst [vmem:[%s1849_s4 + $0x88] sm:$0xff] %v1468_v30   ;;  %v688_v33 = vadd.f32 %v1839_v3, %v687_v31  ;;  %v689_v34 = vpop.f32.mrb[21].mxu0  ;;  %v792_v35 = vadd.f32 %v1839_v3, %v791_v32  ;;  %v793_v36 = vpop.f32.mrb[21].mxu1 }
 0x143   : > { %v690_v37 = vpop.f32.mrb[22].mxu0  ;;  %v794_v38 = vpop.f32.mrb[22].mxu1 }
 0x144   : > { %v691_v39 = vadd.f32 %v1839_v3, %v690_v37  ;;  %v692_v40 = vpop.f32.mrb[23].mxu0  ;;  %v882_v41 = vmax.f32 %v792_v35, 0.0  ;;  %v795_v42 = vadd.f32 %v1839_v3, %v794_v38  ;;  %v796_v43 = vpop.f32.mrb[23].mxu1  ;;  %v856_v44 = vmax.f32 %v688_v33, 0.0 }
 0x146   : > { %v857_v45 = vmax.f32 %v691_v39, 0.0  ;;  %v883_v46 = vmax.f32 %v795_v42, 0.0 }
 0x148   : > { %v1408_v47 = vpack.c.bf16 %v857_v45, %v856_v44  ;;  %v1473_v48 = vpack.c.bf16 %v883_v46, %v882_v41 }
 0x149   : > { %v695_v49 = vpop.f32.mrb[24].mxu0  ;;  %v799_v50 = vpop.f32.mrb[24].mxu1 }
 0x14a   : > { %1509 = vst [vmem:[%s1849_s4 + $0x28] sm:$0xff] %v1408_v47   ;;  %1522 = vst [vmem:[%s1849_s4 + $0x90] sm:$0xff] %v1473_v48   ;;  %v696_v51 = vadd.f32 %v1839_v3, %v695_v49  ;;  %v697_v52 = vpop.f32.mrb[25].mxu0  ;;  %v800_v53 = vadd.f32 %v1839_v3, %v799_v50  ;;  %v801_v54 = vpop.f32.mrb[25].mxu1 }
 0x14b   : > { %v698_v55 = vpop.f32.mrb[26].mxu0  ;;  %v802_v56 = vpop.f32.mrb[26].mxu1 }
 0x14c   : > { %v699_v57 = vadd.f32 %v1839_v3, %v698_v55  ;;  %v700_v58 = vpop.f32.mrb[27].mxu0  ;;  %v884_v59 = vmax.f32 %v800_v53, 0.0  ;;  %v803_v60 = vadd.f32 %v1839_v3, %v802_v56  ;;  %v804_v61 = vpop.f32.mrb[27].mxu1  ;;  %v858_v62 = vmax.f32 %v696_v51, 0.0 }
 0x14e   : > { %v859_v63 = vmax.f32 %v699_v57, 0.0  ;;  %v885_v0 = vmax.f32 %v803_v60, 0.0 }
 0x150   : > { %v1413_v1 = vpack.c.bf16 %v859_v63, %v858_v62  ;;  %v1478_v2 = vpack.c.bf16 %v885_v0, %v884_v59 }
 0x151   : > { %v703_v4 = vpop.f32.mrb[28].mxu0  ;;  %v807_v5 = vpop.f32.mrb[28].mxu1 }
 0x152   : > { %1510 = vst [vmem:[%s1849_s4 + $0x30] sm:$0xff] %v1413_v1   ;;  %1523 = vst [vmem:[%s1849_s4 + $0x98] sm:$0xff] %v1478_v2   ;;  %v704_v6 = vadd.f32 %v1839_v3, %v703_v4  ;;  %v705_v7 = vpop.f32.mrb[29].mxu0  ;;  %v808_v8 = vadd.f32 %v1839_v3, %v807_v5  ;;  %v809_v9 = vpop.f32.mrb[29].mxu1 }
 0x153   : > { %v706_v10 = vpop.f32.mrb[30].mxu0  ;;  %v810_v11 = vpop.f32.mrb[30].mxu1 }
 0x154   : > { %v707_v12 = vadd.f32 %v1839_v3, %v706_v10  ;;  %v708_v13 = vpop.f32.mrb[31].mxu0  ;;  %v886_v14 = vmax.f32 %v808_v8, 0.0  ;;  %v811_v15 = vadd.f32 %v1839_v3, %v810_v11  ;;  %v812_v16 = vpop.f32.mrb[31].mxu1  ;;  %v860_v17 = vmax.f32 %v704_v6, 0.0 }
 0x156   : > { %v861_v18 = vmax.f32 %v707_v12, 0.0  ;;  %v887_v19 = vmax.f32 %v811_v15, 0.0 }
 0x158   : > { %v1418_v20 = vpack.c.bf16 %v861_v18, %v860_v17  ;;  %v1483_v21 = vpack.c.bf16 %v887_v19, %v886_v14 }
 0x159   : > { %v711_v22 = vpop.f32.mrb[32].mxu0  ;;  %v815_v23 = vpop.f32.mrb[32].mxu1 }
 0x15a   : > { %1511 = vst [vmem:[%s1849_s4 + $0x38] sm:$0xff] %v1418_v20   ;;  %1524 = vst [vmem:[%s1849_s4 + $0xa0] sm:$0xff] %v1483_v21   ;;  %v712_v24 = vadd.f32 %v1839_v3, %v711_v22  ;;  %v713_v25 = vpop.f32.mrb[33].mxu0  ;;  %v816_v26 = vadd.f32 %v1839_v3, %v815_v23  ;;  %v817_v27 = vpop.f32.mrb[33].mxu1 }
 0x15b   : > { %v714_v28 = vpop.f32.mrb[34].mxu0  ;;  %v818_v29 = vpop.f32.mrb[34].mxu1 }
 0x15c   : > { %v715_v30 = vadd.f32 %v1839_v3, %v714_v28  ;;  %v716_v31 = vpop.f32.mrb[35].mxu0  ;;  %v888_v32 = vmax.f32 %v816_v26, 0.0  ;;  %v819_v33 = vadd.f32 %v1839_v3, %v818_v29  ;;  %v820_v34 = vpop.f32.mrb[35].mxu1  ;;  %v862_v35 = vmax.f32 %v712_v24, 0.0 }
 0x15e   : > { %v863_v36 = vmax.f32 %v715_v30, 0.0  ;;  %v889_v37 = vmax.f32 %v819_v33, 0.0 }
 0x160   : > { %v1423_v38 = vpack.c.bf16 %v863_v36, %v862_v35  ;;  %v1488_v39 = vpack.c.bf16 %v889_v37, %v888_v32 }
 0x161   : > { %v719_v40 = vpop.f32.mrb[36].mxu0  ;;  %v823_v41 = vpop.f32.mrb[36].mxu1 }
 0x162   : > { %1512 = vst [vmem:[%s1849_s4 + $0x40] sm:$0xff] %v1423_v38   ;;  %1525 = vst [vmem:[%s1849_s4 + $0xa8] sm:$0xff] %v1488_v39   ;;  %v720_v42 = vadd.f32 %v1839_v3, %v719_v40  ;;  %v721_v43 = vpop.f32.mrb[37].mxu0  ;;  %v824_v44 = vadd.f32 %v1839_v3, %v823_v41  ;;  %v825_v45 = vpop.f32.mrb[37].mxu1 }
 0x163   : > { %v722_v46 = vpop.f32.mrb[38].mxu0  ;;  %v826_v47 = vpop.f32.mrb[38].mxu1 }
 0x164   : > { %v723_v48 = vadd.f32 %v1839_v3, %v722_v46  ;;  %v724_v49 = vpop.f32.mrb[39].mxu0  ;;  %v890_v50 = vmax.f32 %v824_v44, 0.0  ;;  %v827_v51 = vadd.f32 %v1839_v3, %v826_v47  ;;  %v828_v52 = vpop.f32.mrb[39].mxu1  ;;  %v864_v53 = vmax.f32 %v720_v42, 0.0 }
 0x166   : > { %v865_v54 = vmax.f32 %v723_v48, 0.0  ;;  %v891_v55 = vmax.f32 %v827_v51, 0.0 }
 0x168   : > { %v1428_v56 = vpack.c.bf16 %v865_v54, %v864_v53  ;;  %v1493_v57 = vpack.c.bf16 %v891_v55, %v890_v50 }
 0x169   : > { %v727_v58 = vpop.f32.mrb[40].mxu0  ;;  %v831_v59 = vpop.f32.mrb[40].mxu1 }
 0x16a   : > { %1513 = vst [vmem:[%s1849_s4 + $0x48] sm:$0xff] %v1428_v56   ;;  %1526 = vst [vmem:[%s1849_s4 + $0xb0] sm:$0xff] %v1493_v57   ;;  %v728_v60 = vadd.f32 %v1839_v3, %v727_v58  ;;  %v729_v61 = vpop.f32.mrb[41].mxu0  ;;  %v832_v62 = vadd.f32 %v1839_v3, %v831_v59  ;;  %v833_v63 = vpop.f32.mrb[41].mxu1 }
 0x16b   : > { %v730_v0 = vpop.f32.mrb[42].mxu0  ;;  %v834_v1 = vpop.f32.mrb[42].mxu1 }
 0x16c   : > { %v731_v2 = vadd.f32 %v1839_v3, %v730_v0  ;;  %v732_v4 = vpop.f32.mrb[43].mxu0  ;;  %v892_v5 = vmax.f32 %v832_v62, 0.0  ;;  %v835_v6 = vadd.f32 %v1839_v3, %v834_v1  ;;  %v836_v7 = vpop.f32.mrb[43].mxu1  ;;  %v866_v8 = vmax.f32 %v728_v60, 0.0 }
 0x16e   : > { %v867_v9 = vmax.f32 %v731_v2, 0.0  ;;  %v893_v10 = vmax.f32 %v835_v6, 0.0 }
 0x170   : > { %v1433_v11 = vpack.c.bf16 %v867_v9, %v866_v8  ;;  %v1498_v12 = vpack.c.bf16 %v893_v10, %v892_v5 }
 0x171   : > { %v735_v13 = vpop.f32.mrb[44].mxu0  ;;  %v839_v14 = vpop.f32.mrb[44].mxu1 }
 0x172   : > { %1514 = vst [vmem:[%s1849_s4 + $0x50] sm:$0xff] %v1433_v11   ;;  %1527 = vst [vmem:[%s1849_s4 + $0xb8] sm:$0xff] %v1498_v12   ;;  %v736_v15 = vadd.f32 %v1839_v3, %v735_v13  ;;  %v737_v16 = vpop.f32.mrb[45].mxu0  ;;  %v840_v17 = vadd.f32 %v1839_v3, %v839_v14  ;;  %v841_v18 = vpop.f32.mrb[45].mxu1 }
 0x173   : > { %v738_v19 = vpop.f32.mrb[46].mxu0  ;;  %v842_v20 = vpop.f32.mrb[46].mxu1 }
 0x174   : > { %v739_v21 = vadd.f32 %v1839_v3, %v738_v19  ;;  %v740_v22 = vpop.f32.mrb[47].mxu0  ;;  %v894_v23 = vmax.f32 %v840_v17, 0.0  ;;  %v843_v24 = vadd.f32 %v1839_v3, %v842_v20  ;;  %v844_v25 = vpop.f32.mrb[47].mxu1  ;;  %v868_v26 = vmax.f32 %v736_v15, 0.0 }
 0x176   : > { %v869_v27 = vmax.f32 %v739_v21, 0.0  ;;  %v895_v28 = vmax.f32 %v843_v24, 0.0 }
 0x178   : > { %v1438_v29 = vpack.c.bf16 %v869_v27, %v868_v26  ;;  %v1503_v30 = vpack.c.bf16 %v895_v28, %v894_v23 }
 0x179   : > { %v743_v31 = vpop.f32.mrb[48].mxu0 }
 0x17a   : > { %1515 = vst [vmem:[%s1849_s4 + $0x58] sm:$0xff] %v1438_v29   ;;  %1528 = vst [vmem:[%s1849_s4 + $0xc0] sm:$0xff] %v1503_v30   ;;  %v744_v32 = vadd.f32 %v1839_v3, %v743_v31  ;;  %v745_v33 = vpop.f32.mrb[49].mxu0 }
 0x17b   : > { %v746_v34 = vpop.f32.mrb[50].mxu0 }
 0x17c   : > { %v747_v35 = vadd.f32 %v1839_v3, %v746_v34  ;;  %v748_v36 = vpop.f32.mrb[51].mxu0  ;;  %v870_v37 = vmax.f32 %v744_v32, 0.0 }
 0x17e   : > { %v871_v38 = vmax.f32 %v747_v35, 0.0 }
 0x180   : > { %v1443_v39 = vpack.c.bf16 %v871_v38, %v870_v37 }
 0x182   : > { %1516 = vst [vmem:[%s1849_s4 + $0x60] sm:$0xff] %v1443_v39  }
 0x183 PF: > { %s13_s12 = sadd.s32 1, %s1667_s12  }
 0x184   : > { %p10_p4 = scmp.ge.s32.totalorder %s13_s12, 4  }
 0x186   :  { %12 = sbr.rel (!%p10_p4) target bundleno = 1 (0x1), region = 62 }

// kernel: convolutional_qnet_forward.4
= control target key start
LH: loop header
LB: loop body
LE: loop exit
PB: predicated region body
PF: predicated region fallthrough
CT: control target
= control target key end

     0   :  { %s1644_s1 = inlined_call_operand.vmem [shape: bf16[512,128], index: 1, kind: input, shape index: {}]   ;;  %s1645_s0 = inlined_call_operand.vmem [shape: bf16[162,512], index: 0, kind: input, shape index: {}]   ;;  %s1646_s2 = inlined_call_operand.vmem [shape: f32[1,128], index: 2, kind: input, shape index: {}]   ;;  %s1647_s3 = inlined_call_operand.vmem [shape: bf16[162,128], index: 3, kind: output, shape index: {}]  }
   0x1   :  { %v1247_v0 = vld [vmem:[%s1644_s1 + $0x40] sm:$0xff]   ;;  %v1251_v4 = vld [vmem:[%s1644_s1 + $0x48] sm:$0xff]   ;;  %v1255_v8 = vld [vmem:[%s1644_s1 + $0x50] sm:$0xff]  }
   0x2   :  { %v1248_v1 = vld [vmem:[%s1644_s1 + $0xc0] sm:$0xff]   ;;  %1083 = vmatprep.subr.bf16.mxu0 %v1247_v0  ;;  %v1252_v5 = vld [vmem:[%s1644_s1 + $0xc8] sm:$0xff]   ;;  %v1256_v9 = vld [vmem:[%s1644_s1 + $0xd0] sm:$0xff]  }
   0x3   :  { %v1249_v2 = vld [vmem:[%s1644_s1] sm:$0xff]   ;;  %1165 = vmatprep.subr.bf16.mxu1 %v1248_v1  ;;  %v1253_v6 = vld [vmem:[%s1644_s1 + $0x8] sm:$0xff]   ;;  %v1257_v10 = vld [vmem:[%s1644_s1 + $0x10] sm:$0xff]  }
   0x4   :  { %v1250_v3 = vld [vmem:[%s1644_s1 + $0x80] sm:$0xff]   ;;  %1084 = vmatpush3.bf16.msra.mxu0 %v1249_v2  ;;  %v1254_v7 = vld [vmem:[%s1644_s1 + $0x88] sm:$0xff]   ;;  %v1258_v11 = vld [vmem:[%s1644_s1 + $0x90] sm:$0xff]  }
   0x5   :  { %1166 = vmatpush3.bf16.msra.mxu1 %v1250_v3  ;;  %1085 = vmatprep.subr.bf16.mxu0 %v1251_v4  ;;  %v1259_v12 = vld [vmem:[%s1644_s1 + $0x58] sm:$0xff]   ;;  %v1263_v16 = vld [vmem:[%s1644_s1 + $0x60] sm:$0xff]   ;;  %v1267_v20 = vld [vmem:[%s1644_s1 + $0x68] sm:$0xff]  }
   0x6   :  { %1167 = vmatprep.subr.bf16.mxu1 %v1252_v5  ;;  %v1260_v13 = vld [vmem:[%s1644_s1 + $0xd8] sm:$0xff]   ;;  %v1264_v17 = vld [vmem:[%s1644_s1 + $0xe0] sm:$0xff]   ;;  %v1268_v21 = vld [vmem:[%s1644_s1 + $0xe8] sm:$0xff]  }
   0x7   :  { %v1261_v14 = vld [vmem:[%s1644_s1 + $0x18] sm:$0xff]   ;;  %v1265_v18 = vld [vmem:[%s1644_s1 + $0x20] sm:$0xff]   ;;  %v1269_v22 = vld [vmem:[%s1644_s1 + $0x28] sm:$0xff]  }
   0x8   :  { %1086 = vmatpush3.bf16.msra.mxu0 %v1253_v6  ;;  %v1262_v15 = vld [vmem:[%s1644_s1 + $0x98] sm:$0xff]   ;;  %v1266_v19 = vld [vmem:[%s1644_s1 + $0xa0] sm:$0xff]   ;;  %v1270_v23 = vld [vmem:[%s1644_s1 + $0xa8] sm:$0xff]  }
   0x9   :  { %1168 = vmatpush3.bf16.msra.mxu1 %v1254_v7  ;;  %1087 = vmatprep.subr.bf16.mxu0 %v1255_v8  ;;  %v1271_v24 = vld [vmem:[%s1644_s1 + $0x70] sm:$0xff]   ;;  %v1275_v28 = vld [vmem:[%s1644_s1 + $0x78] sm:$0xff]   ;;  %v55_v6 = vld [vmem:[%s1645_s0 + $0x140] sm:$0x11] }
   0xa   :  { %1169 = vmatprep.subr.bf16.mxu1 %v1256_v9  ;;  %v1272_v25 = vld [vmem:[%s1644_s1 + $0xf0] sm:$0xff]   ;;  %v1276_v29 = vld [vmem:[%s1644_s1 + $0xf8] sm:$0xff]   ;;  %v56_v7 = vld [vmem:[%s1645_s0 + $0x148] sm:$0x11] }
   0xb   :  { %v1273_v26 = vld [vmem:[%s1644_s1 + $0x30] sm:$0xff]   ;;  %v1277_v30 = vld [vmem:[%s1644_s1 + $0x38] sm:$0xff]  }
   0xc   :  { %1088 = vmatpush3.bf16.msra.mxu0 %v1257_v10  ;;  %v1274_v27 = vld [vmem:[%s1644_s1 + $0xb0] sm:$0xff]   ;;  %v1278_v31 = vld [vmem:[%s1644_s1 + $0xb8] sm:$0xff]   ;;  %v947_v10 = vcombine.high %v55_v6, %v55_v6 }
   0xd   :  { %1170 = vmatpush3.bf16.msra.mxu1 %v1258_v11  ;;  %1089 = vmatprep.subr.bf16.mxu0 %v1259_v12  ;;  %v1279_v32 = vld [vmem:[%s1645_s0] ss:$16 sps:$4 sm:$0xff]   ;;  %v1281_v33 = vld [vmem:[%s1645_s0 + $0x4] ss:$16 sps:$4 sm:$0xff]   ;;  %v1282_v34 = vld [vmem:[%s1645_s0 + $0x8] ss:$16 sps:$4 sm:$0xff]   ;;  %v949_v11 = vcombine.high %v56_v7, %v56_v7  ;;  %v946_v12 = vcombine.low %v55_v6, %v55_v6 }
   0xe   :  { %1171 = vmatprep.subr.bf16.mxu1 %v1260_v13  ;;  %v1284_v35 = vld [vmem:[%s1645_s0 + $0xc] ss:$16 sps:$4 sm:$0xff]   ;;  %566 = vmatprep.mubr.bf16.mxu0 %v1281_v33  ;;  %v1285_v36 = vld [vmem:[%s1645_s0 + $0x24] ss:$16 sps:$4 sm:$0xff]   ;;  %v1289_v38 = vld [vmem:[%s1645_s0 + $0x20] ss:$16 sps:$4 sm:$0xff]   ;;  %v948_v13 = vcombine.low %v56_v7, %v56_v7 }
   0xf   :  { %686 = vmatprep.mubr.bf16.mxu1 %v1284_v35  ;;  %v1287_v37 = vld [vmem:[%s1645_s0 + $0x2c] ss:$16 sps:$4 sm:$0xff]   ;;  %v1290_v39 = vld [vmem:[%s1645_s0 + $0x28] ss:$16 sps:$4 sm:$0xff]   ;;  %v1291_v40 = vld [vmem:[%s1645_s0 + $0x44] ss:$16 sps:$4 sm:$0xff]  }
  0x10   :  { %1090 = vmatpush3.bf16.msra.mxu0 %v1261_v14  ;;  %v1293_v41 = vld [vmem:[%s1645_s0 + $0x4c] ss:$16 sps:$4 sm:$0xff]   ;;  %v1295_v42 = vld [vmem:[%s1645_s0 + $0x40] ss:$16 sps:$4 sm:$0xff]   ;;  %v1296_v43 = vld [vmem:[%s1645_s0 + $0x48] ss:$16 sps:$4 sm:$0xff]  }
  0x11   :  { %1172 = vmatpush3.bf16.msra.mxu1 %v1262_v15  ;;  %1091 = vmatprep.subr.bf16.mxu0 %v1263_v16  ;;  %v1297_v44 = vld [vmem:[%s1645_s0 + $0x64] ss:$16 sps:$4 sm:$0xff]   ;;  %v1299_v45 = vld [vmem:[%s1645_s0 + $0x6c] ss:$16 sps:$4 sm:$0xff]   ;;  %v1301_v46 = vld [vmem:[%s1645_s0 + $0x60] ss:$16 sps:$4 sm:$0xff]  }
  0x12   :  { %1173 = vmatprep.subr.bf16.mxu1 %v1264_v17  ;;  %v1302_v47 = vld [vmem:[%s1645_s0 + $0x68] ss:$16 sps:$4 sm:$0xff]   ;;  %v1303_v48 = vld [vmem:[%s1645_s0 + $0x84] ss:$16 sps:$4 sm:$0xff]   ;;  %v1305_v49 = vld [vmem:[%s1645_s0 + $0x8c] ss:$16 sps:$4 sm:$0xff]  }
  0x13   :  { %v1307_v50 = vld [vmem:[%s1645_s0 + $0x80] ss:$16 sps:$4 sm:$0xff]   ;;  %v1308_v51 = vld [vmem:[%s1645_s0 + $0x88] ss:$16 sps:$4 sm:$0xff]   ;;  %v1309_v52 = vld [vmem:[%s1645_s0 + $0xa4] ss:$16 sps:$4 sm:$0xff]  }
  0x14   :  { %1092 = vmatpush3.bf16.msra.mxu0 %v1265_v18  ;;  %v1311_v53 = vld [vmem:[%s1645_s0 + $0xac] ss:$16 sps:$4 sm:$0xff]   ;;  %v1313_v54 = vld [vmem:[%s1645_s0 + $0xa0] ss:$16 sps:$4 sm:$0xff]   ;;  %v1314_v55 = vld [vmem:[%s1645_s0 + $0xa8] ss:$16 sps:$4 sm:$0xff]  }
  0x15   :  { %1174 = vmatpush3.bf16.msra.mxu1 %v1266_v19  ;;  %1093 = vmatprep.subr.bf16.mxu0 %v1267_v20  ;;  %v1315_v56 = vld [vmem:[%s1645_s0 + $0xc4] ss:$16 sps:$4 sm:$0xff]   ;;  %v1317_v57 = vld [vmem:[%s1645_s0 + $0xcc] ss:$16 sps:$4 sm:$0xff]   ;;  %v1319_v58 = vld [vmem:[%s1645_s0 + $0xc0] ss:$16 sps:$4 sm:$0xff]  }
  0x16   :  { %1175 = vmatprep.subr.bf16.mxu1 %v1268_v21  ;;  %v1320_v59 = vld [vmem:[%s1645_s0 + $0xc8] ss:$16 sps:$4 sm:$0xff]   ;;  %v1321_v60 = vld [vmem:[%s1645_s0 + $0xe4] ss:$16 sps:$4 sm:$0xff]   ;;  %v1323_v61 = vld [vmem:[%s1645_s0 + $0xec] ss:$16 sps:$4 sm:$0xff]  }
  0x17   :  { %v1325_v62 = vld [vmem:[%s1645_s0 + $0xe0] ss:$16 sps:$4 sm:$0xff]   ;;  %v1326_v63 = vld [vmem:[%s1645_s0 + $0xe8] ss:$16 sps:$4 sm:$0xff]   ;;  %v1327_v0 = vld [vmem:[%s1645_s0 + $0x104] ss:$16 sps:$4 sm:$0xff]  }
  0x18   :  { %1094 = vmatpush3.bf16.msra.mxu0 %v1269_v22  ;;  %v1329_v1 = vld [vmem:[%s1645_s0 + $0x10c] ss:$16 sps:$4 sm:$0xff]   ;;  %v1331_v2 = vld [vmem:[%s1645_s0 + $0x100] ss:$16 sps:$4 sm:$0xff]   ;;  %v1332_v3 = vld [vmem:[%s1645_s0 + $0x108] ss:$16 sps:$4 sm:$0xff]  }
  0x19   :  { %1176 = vmatpush3.bf16.msra.mxu1 %v1270_v23  ;;  %1095 = vmatprep.subr.bf16.mxu0 %v1271_v24  ;;  %v1333_v4 = vld [vmem:[%s1645_s0 + $0x124] ss:$16 sps:$4 sm:$0xff]   ;;  %v1335_v5 = vld [vmem:[%s1645_s0 + $0x12c] ss:$16 sps:$4 sm:$0xff]   ;;  %v1337_v8 = vld [vmem:[%s1645_s0 + $0x120] ss:$16 sps:$4 sm:$0xff]  }
  0x1a   :  { %1177 = vmatprep.subr.bf16.mxu1 %v1272_v25  ;;  %v1338_v9 = vld [vmem:[%s1645_s0 + $0x128] ss:$16 sps:$4 sm:$0xff]   ;;  %v1588_v16 = vld [vmem:[%s1646_s2] ss:$0 sm:$0xff] }
  0x1c   :  { %1096 = vmatpush3.bf16.msra.mxu0 %v1273_v26 }
  0x1d   :  { %1178 = vmatpush3.bf16.msra.mxu1 %v1274_v27  ;;  %1097 = vmatprep.subr.bf16.mxu0 %v1275_v28 }
  0x1e   :  { %1179 = vmatprep.subr.bf16.mxu1 %v1276_v29 }
  0x20   :  { %1098 = vmatpush3.bf16.msra.mxu0 %v1277_v30 }
  0x21   :  { %1180 = vmatpush3.bf16.msra.mxu1 %v1278_v31 }
  0x23   :  { %567 = vmatmul.mubr.bf16.vlgmr.msra.gmra.mrb[0].mxu0 %v1279_v32 }
  0x24   :  { %687 = vmatmul.mubr.bf16.vlgmr.msra.gmra.mrb[0].mxu1 %v1282_v34  ;;  %574 = vmatprep.mubr.bf16.mxu0 %v1285_v36 }
  0x25   :  { %694 = vmatprep.mubr.bf16.mxu1 %v1287_v37 }
  0x2b   :  { %575 = vmatmul.mubr.bf16.gmra.mrb[4].mxu0 %v1289_v38 }
  0x2c   :  { %695 = vmatmul.mubr.bf16.gmra.mrb[4].mxu1 %v1290_v39  ;;  %582 = vmatprep.mubr.bf16.mxu0 %v1291_v40 }
  0x2d   :  { %702 = vmatprep.mubr.bf16.mxu1 %v1293_v41 }
  0x33   :  { %583 = vmatmul.mubr.bf16.gmra.mrb[8].mxu0 %v1295_v42 }
  0x34   :  { %703 = vmatmul.mubr.bf16.gmra.mrb[8].mxu1 %v1296_v43  ;;  %590 = vmatprep.mubr.bf16.mxu0 %v1297_v44 }
  0x35   :  { %710 = vmatprep.mubr.bf16.mxu1 %v1299_v45 }
  0x3b   :  { %591 = vmatmul.mubr.bf16.gmra.mrb[12].mxu0 %v1301_v46 }
  0x3c   :  { %711 = vmatmul.mubr.bf16.gmra.mrb[12].mxu1 %v1302_v47  ;;  %598 = vmatprep.mubr.bf16.mxu0 %v1303_v48 }
  0x3d   :  { %718 = vmatprep.mubr.bf16.mxu1 %v1305_v49 }
  0x43   :  { %599 = vmatmul.mubr.bf16.gmra.mrb[16].mxu0 %v1307_v50 }
  0x44   :  { %719 = vmatmul.mubr.bf16.gmra.mrb[16].mxu1 %v1308_v51  ;;  %606 = vmatprep.mubr.bf16.mxu0 %v1309_v52 }
  0x45   :  { %726 = vmatprep.mubr.bf16.mxu1 %v1311_v53 }
  0x4b   :  { %607 = vmatmul.mubr.bf16.gmra.mrb[20].mxu0 %v1313_v54 }
  0x4c   :  { %727 = vmatmul.mubr.bf16.gmra.mrb[20].mxu1 %v1314_v55  ;;  %614 = vmatprep.mubr.bf16.mxu0 %v1315_v56 }
  0x4d   :  { %734 = vmatprep.mubr.bf16.mxu1 %v1317_v57 }
  0x53   :  { %615 = vmatmul.mubr.bf16.gmra.mrb[24].mxu0 %v1319_v58 }
  0x54   :  { %735 = vmatmul.mubr.bf16.gmra.mrb[24].mxu1 %v1320_v59  ;;  %622 = vmatprep.mubr.bf16.mxu0 %v1321_v60 }
  0x55   :  { %742 = vmatprep.mubr.bf16.mxu1 %v1323_v61 }
  0x5b   :  { %623 = vmatmul.mubr.bf16.gmra.mrb[28].mxu0 %v1325_v62 }
  0x5c   :  { %743 = vmatmul.mubr.bf16.gmra.mrb[28].mxu1 %v1326_v63  ;;  %630 = vmatprep.mubr.bf16.mxu0 %v1327_v0 }
  0x5d   :  { %750 = vmatprep.mubr.bf16.mxu1 %v1329_v1 }
  0x63   :  { %631 = vmatmul.mubr.bf16.gmra.mrb[32].mxu0 %v1331_v2 }
  0x64   :  { %751 = vmatmul.mubr.bf16.gmra.mrb[32].mxu1 %v1332_v3  ;;  %638 = vmatprep.mubr.bf16.mxu0 %v1333_v4 }
  0x65   :  { %758 = vmatprep.mubr.bf16.mxu1 %v1335_v5 }
  0x6b   :  { %639 = vmatmul.mubr.bf16.gmra.mrb[36].mxu0 %v1337_v8 }
  0x6c   :  { %759 = vmatmul.mubr.bf16.gmra.mrb[36].mxu1 %v1338_v9  ;;  %646 = vmatprep.mubr.bf16.mxu0 %v947_v10 }
  0x6d   :  { %766 = vmatprep.mubr.bf16.mxu1 %v949_v11 }
  0x73   :  { %647 = vmatmul.mubr.bf16.gmra.mrb[40].mxu0 %v946_v12 }
  0x74   :  { %767 = vmatmul.mubr.bf16.gmra.mrb[40].mxu1 %v948_v13 }
  0xf6   :  { %v1099_v14 = vpop.f32.mrb[0].mxu0 }
  0xf7   :  { %v1181_v15 = vpop.f32.mrb[0].mxu1  ;;  %v1100_v17 = vpop.f32.mrb[1].mxu0 }
  0xf8   :  { %v1101_v18 = vadd.f32 %v1100_v17, %v1099_v14  ;;  %v1182_v19 = vpop.f32.mrb[1].mxu1  ;;  %v1102_v20 = vpop.f32.mrb[2].mxu0 }
  0xf9   :  { %v1183_v21 = vadd.f32 %v1182_v19, %v1181_v15  ;;  %v1184_v22 = vpop.f32.mrb[2].mxu1  ;;  %v1103_v23 = vpop.f32.mrb[3].mxu0 }
  0xfa   :  { %v569_v24 = vadd.f32 %v1101_v18, %v1588_v16  ;;  %v1104_v25 = vadd.f32 %v1103_v23, %v1102_v20  ;;  %v1185_v26 = vpop.f32.mrb[3].mxu1 }
  0xfb   :  { %v1186_v27 = vadd.f32 %v1185_v26, %v1184_v22 }
  0xfc   :  { %v689_v28 = vadd.f32 %v1183_v21, %v569_v24  ;;  %v572_v29 = vadd.f32 %v1104_v25, %v1588_v16 }
  0xfe   :  { %v692_v30 = vadd.f32 %v1186_v27, %v572_v29  ;;  %v1105_v31 = vpop.f32.mrb[4].mxu0  ;;  %v774_v34 = vmax.f32 %v689_v28, 0.0 }
  0xff   :  { %v1187_v32 = vpop.f32.mrb[4].mxu1  ;;  %v1106_v33 = vpop.f32.mrb[5].mxu0 }
 0x100   :  { %v775_v35 = vmax.f32 %v692_v30, 0.0  ;;  %v1107_v36 = vadd.f32 %v1106_v33, %v1105_v31  ;;  %v1188_v37 = vpop.f32.mrb[5].mxu1  ;;  %v1108_v38 = vpop.f32.mrb[6].mxu0 }
 0x101   :  { %v1189_v39 = vadd.f32 %v1188_v37, %v1187_v32  ;;  %v1190_v40 = vpop.f32.mrb[6].mxu1  ;;  %v1109_v41 = vpop.f32.mrb[7].mxu0 }
 0x102   :  { %v1027_v42 = vpack.c.bf16 %v775_v35, %v774_v34  ;;  %v577_v43 = vadd.f32 %v1107_v36, %v1588_v16  ;;  %v1110_v44 = vadd.f32 %v1109_v41, %v1108_v38  ;;  %v1191_v45 = vpop.f32.mrb[7].mxu1 }
 0x103   :  { %v1192_v46 = vadd.f32 %v1191_v45, %v1190_v40 }
 0x104   :  { %1028 = vst [vmem:[%s1647_s3] sm:$0xff] %v1027_v42   ;;  %v697_v47 = vadd.f32 %v1189_v39, %v577_v43  ;;  %v580_v48 = vadd.f32 %v1110_v44, %v1588_v16 }
 0x106   :  { %v700_v49 = vadd.f32 %v1192_v46, %v580_v48  ;;  %v1111_v50 = vpop.f32.mrb[8].mxu0  ;;  %v776_v53 = vmax.f32 %v697_v47, 0.0 }
 0x107   :  { %v1193_v51 = vpop.f32.mrb[8].mxu1  ;;  %v1112_v52 = vpop.f32.mrb[9].mxu0 }
 0x108   :  { %v777_v54 = vmax.f32 %v700_v49, 0.0  ;;  %v1113_v55 = vadd.f32 %v1112_v52, %v1111_v50  ;;  %v1194_v56 = vpop.f32.mrb[9].mxu1  ;;  %v1114_v57 = vpop.f32.mrb[10].mxu0 }
 0x109   :  { %v1195_v58 = vadd.f32 %v1194_v56, %v1193_v51  ;;  %v1196_v59 = vpop.f32.mrb[10].mxu1  ;;  %v1115_v60 = vpop.f32.mrb[11].mxu0 }
 0x10a   :  { %v1032_v61 = vpack.c.bf16 %v777_v54, %v776_v53  ;;  %v585_v62 = vadd.f32 %v1113_v55, %v1588_v16  ;;  %v1116_v63 = vadd.f32 %v1115_v60, %v1114_v57  ;;  %v1197_v0 = vpop.f32.mrb[11].mxu1 }
 0x10b   :  { %v1198_v1 = vadd.f32 %v1197_v0, %v1196_v59 }
 0x10c   :  { %1074 = vst [vmem:[%s1647_s3 + $0x8] sm:$0xff] %v1032_v61   ;;  %v705_v2 = vadd.f32 %v1195_v58, %v585_v62  ;;  %v588_v3 = vadd.f32 %v1116_v63, %v1588_v16 }
 0x10e   :  { %v708_v4 = vadd.f32 %v1198_v1, %v588_v3  ;;  %v1117_v5 = vpop.f32.mrb[12].mxu0  ;;  %v778_v8 = vmax.f32 %v705_v2, 0.0 }
 0x10f   :  { %v1199_v6 = vpop.f32.mrb[12].mxu1  ;;  %v1118_v7 = vpop.f32.mrb[13].mxu0 }
 0x110   :  { %v779_v9 = vmax.f32 %v708_v4, 0.0  ;;  %v1119_v10 = vadd.f32 %v1118_v7, %v1117_v5  ;;  %v1200_v11 = vpop.f32.mrb[13].mxu1  ;;  %v1120_v12 = vpop.f32.mrb[14].mxu0 }
 0x111   :  { %v1201_v13 = vadd.f32 %v1200_v11, %v1199_v6  ;;  %v1202_v14 = vpop.f32.mrb[14].mxu1  ;;  %v1121_v15 = vpop.f32.mrb[15].mxu0 }
 0x112   :  { %v1037_v17 = vpack.c.bf16 %v779_v9, %v778_v8  ;;  %v593_v18 = vadd.f32 %v1119_v10, %v1588_v16  ;;  %v1122_v19 = vadd.f32 %v1121_v15, %v1120_v12  ;;  %v1203_v20 = vpop.f32.mrb[15].mxu1 }
 0x113   :  { %v1204_v21 = vadd.f32 %v1203_v20, %v1202_v14 }
 0x114   :  { %1075 = vst [vmem:[%s1647_s3 + $0x10] sm:$0xff] %v1037_v17   ;;  %v713_v22 = vadd.f32 %v1201_v13, %v593_v18  ;;  %v596_v23 = vadd.f32 %v1122_v19, %v1588_v16 }
 0x116   :  { %v716_v24 = vadd.f32 %v1204_v21, %v596_v23  ;;  %v1123_v25 = vpop.f32.mrb[16].mxu0  ;;  %v780_v28 = vmax.f32 %v713_v22, 0.0 }
 0x117   :  { %v1205_v26 = vpop.f32.mrb[16].mxu1  ;;  %v1124_v27 = vpop.f32.mrb[17].mxu0 }
 0x118   :  { %v781_v29 = vmax.f32 %v716_v24, 0.0  ;;  %v1125_v30 = vadd.f32 %v1124_v27, %v1123_v25  ;;  %v1206_v31 = vpop.f32.mrb[17].mxu1  ;;  %v1126_v32 = vpop.f32.mrb[18].mxu0 }
 0x119   :  { %v1207_v33 = vadd.f32 %v1206_v31, %v1205_v26  ;;  %v1208_v34 = vpop.f32.mrb[18].mxu1  ;;  %v1127_v35 = vpop.f32.mrb[19].mxu0 }
 0x11a   :  { %v1042_v36 = vpack.c.bf16 %v781_v29, %v780_v28  ;;  %v601_v37 = vadd.f32 %v1125_v30, %v1588_v16  ;;  %v1128_v38 = vadd.f32 %v1127_v35, %v1126_v32  ;;  %v1209_v39 = vpop.f32.mrb[19].mxu1 }
 0x11b   :  { %v1210_v40 = vadd.f32 %v1209_v39, %v1208_v34 }
 0x11c   :  { %1076 = vst [vmem:[%s1647_s3 + $0x18] sm:$0xff] %v1042_v36   ;;  %v721_v41 = vadd.f32 %v1207_v33, %v601_v37  ;;  %v604_v42 = vadd.f32 %v1128_v38, %v1588_v16 }
 0x11e   :  { %v724_v43 = vadd.f32 %v1210_v40, %v604_v42  ;;  %v1129_v44 = vpop.f32.mrb[20].mxu0  ;;  %v782_v47 = vmax.f32 %v721_v41, 0.0 }
 0x11f   :  { %v1211_v45 = vpop.f32.mrb[20].mxu1  ;;  %v1130_v46 = vpop.f32.mrb[21].mxu0 }
 0x120   :  { %v783_v48 = vmax.f32 %v724_v43, 0.0  ;;  %v1131_v49 = vadd.f32 %v1130_v46, %v1129_v44  ;;  %v1212_v50 = vpop.f32.mrb[21].mxu1  ;;  %v1132_v51 = vpop.f32.mrb[22].mxu0 }
 0x121   :  { %v1213_v52 = vadd.f32 %v1212_v50, %v1211_v45  ;;  %v1214_v53 = vpop.f32.mrb[22].mxu1  ;;  %v1133_v54 = vpop.f32.mrb[23].mxu0 }
 0x122   :  { %v1047_v55 = vpack.c.bf16 %v783_v48, %v782_v47  ;;  %v609_v56 = vadd.f32 %v1131_v49, %v1588_v16  ;;  %v1134_v57 = vadd.f32 %v1133_v54, %v1132_v51  ;;  %v1215_v58 = vpop.f32.mrb[23].mxu1 }
 0x123   :  { %v1216_v59 = vadd.f32 %v1215_v58, %v1214_v53 }
 0x124   :  { %1077 = vst [vmem:[%s1647_s3 + $0x20] sm:$0xff] %v1047_v55   ;;  %v729_v60 = vadd.f32 %v1213_v52, %v609_v56  ;;  %v612_v61 = vadd.f32 %v1134_v57, %v1588_v16 }
 0x126   :  { %v732_v62 = vadd.f32 %v1216_v59, %v612_v61  ;;  %v1135_v63 = vpop.f32.mrb[24].mxu0  ;;  %v784_v2 = vmax.f32 %v729_v60, 0.0 }
 0x127   :  { %v1217_v0 = vpop.f32.mrb[24].mxu1  ;;  %v1136_v1 = vpop.f32.mrb[25].mxu0 }
 0x128   :  { %v785_v3 = vmax.f32 %v732_v62, 0.0  ;;  %v1137_v4 = vadd.f32 %v1136_v1, %v1135_v63  ;;  %v1218_v5 = vpop.f32.mrb[25].mxu1  ;;  %v1138_v6 = vpop.f32.mrb[26].mxu0 }
 0x129   :  { %v1219_v7 = vadd.f32 %v1218_v5, %v1217_v0  ;;  %v1220_v8 = vpop.f32.mrb[26].mxu1  ;;  %v1139_v9 = vpop.f32.mrb[27].mxu0 }
 0x12a   :  { %v1052_v10 = vpack.c.bf16 %v785_v3, %v784_v2  ;;  %v617_v11 = vadd.f32 %v1137_v4, %v1588_v16  ;;  %v1140_v12 = vadd.f32 %v1139_v9, %v1138_v6  ;;  %v1221_v13 = vpop.f32.mrb[27].mxu1 }
 0x12b   :  { %v1222_v14 = vadd.f32 %v1221_v13, %v1220_v8 }
 0x12c   :  { %1078 = vst [vmem:[%s1647_s3 + $0x28] sm:$0xff] %v1052_v10   ;;  %v737_v15 = vadd.f32 %v1219_v7, %v617_v11  ;;  %v620_v17 = vadd.f32 %v1140_v12, %v1588_v16 }
 0x12e   :  { %v740_v18 = vadd.f32 %v1222_v14, %v620_v17  ;;  %v1141_v19 = vpop.f32.mrb[28].mxu0  ;;  %v786_v22 = vmax.f32 %v737_v15, 0.0 }
 0x12f   :  { %v1223_v20 = vpop.f32.mrb[28].mxu1  ;;  %v1142_v21 = vpop.f32.mrb[29].mxu0 }
 0x130   :  { %v787_v23 = vmax.f32 %v740_v18, 0.0  ;;  %v1143_v24 = vadd.f32 %v1142_v21, %v1141_v19  ;;  %v1224_v25 = vpop.f32.mrb[29].mxu1  ;;  %v1144_v26 = vpop.f32.mrb[30].mxu0 }
 0x131   :  { %v1225_v27 = vadd.f32 %v1224_v25, %v1223_v20  ;;  %v1226_v28 = vpop.f32.mrb[30].mxu1  ;;  %v1145_v29 = vpop.f32.mrb[31].mxu0 }
 0x132   :  { %v1057_v30 = vpack.c.bf16 %v787_v23, %v786_v22  ;;  %v625_v31 = vadd.f32 %v1143_v24, %v1588_v16  ;;  %v1146_v32 = vadd.f32 %v1145_v29, %v1144_v26  ;;  %v1227_v33 = vpop.f32.mrb[31].mxu1 }
 0x133   :  { %v1228_v34 = vadd.f32 %v1227_v33, %v1226_v28 }
 0x134   :  { %1079 = vst [vmem:[%s1647_s3 + $0x30] sm:$0xff] %v1057_v30   ;;  %v745_v35 = vadd.f32 %v1225_v27, %v625_v31  ;;  %v628_v36 = vadd.f32 %v1146_v32, %v1588_v16 }
 0x136   :  { %v748_v37 = vadd.f32 %v1228_v34, %v628_v36  ;;  %v1147_v38 = vpop.f32.mrb[32].mxu0  ;;  %v788_v41 = vmax.f32 %v745_v35, 0.0 }
 0x137   :  { %v1229_v39 = vpop.f32.mrb[32].mxu1  ;;  %v1148_v40 = vpop.f32.mrb[33].mxu0 }
 0x138   :  { %v789_v42 = vmax.f32 %v748_v37, 0.0  ;;  %v1149_v43 = vadd.f32 %v1148_v40, %v1147_v38  ;;  %v1230_v44 = vpop.f32.mrb[33].mxu1  ;;  %v1150_v45 = vpop.f32.mrb[34].mxu0 }
 0x139   :  { %v1231_v46 = vadd.f32 %v1230_v44, %v1229_v39  ;;  %v1232_v47 = vpop.f32.mrb[34].mxu1  ;;  %v1151_v48 = vpop.f32.mrb[35].mxu0 }
 0x13a   :  { %v1062_v49 = vpack.c.bf16 %v789_v42, %v788_v41  ;;  %v633_v50 = vadd.f32 %v1149_v43, %v1588_v16  ;;  %v1152_v51 = vadd.f32 %v1151_v48, %v1150_v45  ;;  %v1233_v52 = vpop.f32.mrb[35].mxu1 }
 0x13b   :  { %v1234_v53 = vadd.f32 %v1233_v52, %v1232_v47 }
 0x13c   :  { %1080 = vst [vmem:[%s1647_s3 + $0x38] sm:$0xff] %v1062_v49   ;;  %v753_v54 = vadd.f32 %v1231_v46, %v633_v50  ;;  %v636_v55 = vadd.f32 %v1152_v51, %v1588_v16 }
 0x13e   :  { %v756_v56 = vadd.f32 %v1234_v53, %v636_v55  ;;  %v1153_v57 = vpop.f32.mrb[36].mxu0  ;;  %v790_v60 = vmax.f32 %v753_v54, 0.0 }
 0x13f   :  { %v1235_v58 = vpop.f32.mrb[36].mxu1  ;;  %v1154_v59 = vpop.f32.mrb[37].mxu0 }
 0x140   :  { %v791_v61 = vmax.f32 %v756_v56, 0.0  ;;  %v1155_v62 = vadd.f32 %v1154_v59, %v1153_v57  ;;  %v1236_v63 = vpop.f32.mrb[37].mxu1  ;;  %v1156_v0 = vpop.f32.mrb[38].mxu0 }
 0x141   :  { %v1237_v1 = vadd.f32 %v1236_v63, %v1235_v58  ;;  %v1238_v2 = vpop.f32.mrb[38].mxu1  ;;  %v1157_v3 = vpop.f32.mrb[39].mxu0 }
 0x142   :  { %v1067_v4 = vpack.c.bf16 %v791_v61, %v790_v60  ;;  %v641_v5 = vadd.f32 %v1155_v62, %v1588_v16  ;;  %v1158_v6 = vadd.f32 %v1157_v3, %v1156_v0  ;;  %v1239_v7 = vpop.f32.mrb[39].mxu1 }
 0x143   :  { %v1240_v8 = vadd.f32 %v1239_v7, %v1238_v2 }
 0x144   :  { %1081 = vst [vmem:[%s1647_s3 + $0x40] sm:$0xff] %v1067_v4   ;;  %v761_v9 = vadd.f32 %v1237_v1, %v641_v5  ;;  %v644_v10 = vadd.f32 %v1158_v6, %v1588_v16 }
 0x146   :  { %v764_v11 = vadd.f32 %v1240_v8, %v644_v10  ;;  %v1159_v12 = vpop.f32.mrb[40].mxu0  ;;  %v792_v15 = vmax.f32 %v761_v9, 0.0 }
 0x147   :  { %v1241_v13 = vpop.f32.mrb[40].mxu1  ;;  %v1160_v14 = vpop.f32.mrb[41].mxu0 }
 0x148   :  { %v793_v17 = vmax.f32 %v764_v11, 0.0  ;;  %v1161_v18 = vadd.f32 %v1160_v14, %v1159_v12  ;;  %v1242_v19 = vpop.f32.mrb[41].mxu1  ;;  %v1162_v20 = vpop.f32.mrb[42].mxu0 }
 0x149   :  { %v1243_v21 = vadd.f32 %v1242_v19, %v1241_v13  ;;  %v1244_v22 = vpop.f32.mrb[42].mxu1  ;;  %v1163_v23 = vpop.f32.mrb[43].mxu0 }
 0x14a   :  { %v1072_v24 = vpack.c.bf16 %v793_v17, %v792_v15  ;;  %v649_v25 = vadd.f32 %v1161_v18, %v1588_v16  ;;  %v1245_v26 = vpop.f32.mrb[43].mxu1 }
 0x14c   :  { %1082 = vst [vmem:[%s1647_s3 + $0x48] sm:$0xff] %v1072_v24   ;;  %v769_v27 = vadd.f32 %v1243_v21, %v649_v25 }
 0x14e   :  { %v794_v28 = vmax.f32 %v769_v27, 0.0 }
 0x150   :  { %v1023_v29 = vpack.c.bf16 %v794_v28, %v794_v28 }
 0x152   :  { %900 = vst [vmem:[%s1647_s3 + $0x50] sm:$0x1] %v1023_v29 }

// kernel: convolutional_qnet_forward.5
= control target key start
LH: loop header
LB: loop body
LE: loop exit
PB: predicated region body
PF: predicated region fallthrough
CT: control target
= control target key end

     0   :  { %12 = vsyncpa [#allocation4], 0  ;;  %v1481_v0 = vmov 0.0   ;;  %s1528_s24 = smov 0   ;;  %s1806_s0 = inlined_call_operand.vmem [shape: bf16[49,2,576], index: 0, kind: input, shape index: {}]   ;;  %s1807_s1 = inlined_call_operand.vmem [shape: bf16[576,64], index: 1, kind: input, shape index: {}]   ;;  %s1808_s2 = inlined_call_operand.vmem [shape: f32[1,64], index: 2, kind: input, shape index: {}]   ;;  %s1809_s3 = inlined_call_operand.vmem [shape: bf16[49,64,512], index: 3, kind: input, shape index: {}]   ;;  %s1810_s4 = inlined_call_operand.vmem [shape: f32[1,512], index: 4, kind: input, shape index: {}]   ;;  %s1811_s5 = inlined_call_operand.vmem [shape: bf16[512,128], index: 5, kind: input, shape index: {}]   ;;  %s1812_s6 = inlined_call_operand.vmem [shape: f32[1,128], index: 6, kind: input, shape index: {}]   ;;  %s1813_s7 = inlined_call_operand.hbm [shape: f32[2,128], index: 7, kind: output, shape index: {}]  }
   0x1   :  { %28 = vst [vmem:[#allocation2] sm:$0xff] %v1481_v0 }
   0x2 LB: > { %v1356_v1 = vld [vmem:[%s1807_s1 + $0x40] sm:$0xff]   ;;  %v1360_v5 = vld [vmem:[%s1807_s1 + $0x48] sm:$0xff]   ;;  %v1364_v9 = vld [vmem:[%s1807_s1 + $0x50] sm:$0xff]   ;;  %v122_v29 = vlaneseq  ;;  %s35_s16 = smul.u32 5, %s1479_s24  ;;  %v1482_v34 = vmov 1966171168   ;;  %s1479_s24 = sphi %s1528_s24, %s34_s24  }
   0x3   : > { %v1357_v2 = vld [vmem:[%s1807_s1] sm:$0xff]   ;;  %1236 = vmatprep.subr.bf16.mxu0 %v1356_v1  ;;  %v1361_v6 = vld [vmem:[%s1807_s1 + $0x8] sm:$0xff]   ;;  %v1365_v10 = vld [vmem:[%s1807_s1 + $0x10] sm:$0xff]   ;;  %v120_v35 = vunpack.c.l.s4 %v1482_v34  ;;  %s1235_s25 = sshll.u32 %s1479_s24, 7  ;;  %v1483_v37 = vmov 0.0   ;;  %vm1484_vm0 = vmmov 0  }
   0x4   : > { %v1358_v3 = vld [vmem:[%s1807_s1 + $0xc0] sm:$0xff]   ;;  %1237 = vmatpush3.bf16.msra.mxu0 %v1357_v2  ;;  %v1362_v7 = vld [vmem:[%s1807_s1 + $0xc8] sm:$0xff]   ;;  %v1366_v11 = vld [vmem:[%s1807_s1 + $0xd0] sm:$0xff]   ;;  %v1627_v33 = vshrl.u32 %v122_v29, 7  ;;  %s36_s23 = scalar_lea.vmem %s1806_s0, %s35_s16  ;;  %s1639_s30 = scalar_lea.vmem %s1809_s3, %s1235_s25  ;;  %vm377_vm1 = vcmask 523264  }
   0x5   : > { %v1359_v4 = vld [vmem:[%s1807_s1 + $0x80] sm:$0xff]   ;;  %1258 = vmatprep.subr.bf16.mxu1 %v1358_v3  ;;  %1238 = vmatprep.subr.bf16.mxu0 %v1360_v5  ;;  %v1363_v8 = vld [vmem:[%s1807_s1 + $0x88] sm:$0xff]   ;;  %v1367_v12 = vld [vmem:[%s1807_s1 + $0x90] sm:$0xff]   ;;  %v121_v38 = vunpack.c.0.s8 %v120_v35  ;;  %s34_s24 = sadd.s32 1, %s1479_s24  }
   0x6   : > { %1259 = vmatpush3.bf16.msra.mxu1 %v1359_v4  ;;  %v1368_v13 = vld [vmem:[%s1807_s1 + $0x58] sm:$0xff]   ;;  %v1372_v17 = vld [vmem:[%s1807_s1 + $0x60] sm:$0xff]   ;;  %v1376_v21 = vld [vmem:[%s1807_s1 + $0x68] sm:$0xff]   ;;  %p31_p0 = scmp.ge.s32.totalorder %s34_s24, 49  }
   0x7   : > { %1260 = vmatprep.subr.bf16.mxu1 %v1362_v7  ;;  %v1369_v14 = vld [vmem:[%s1807_s1 + $0x18] sm:$0xff]   ;;  %v1373_v18 = vld [vmem:[%s1807_s1 + $0x20] sm:$0xff]   ;;  %v1377_v22 = vld [vmem:[%s1807_s1 + $0x28] sm:$0xff]   ;;  %v124_v40 = vsub.s32 %v121_v38, %v1627_v33  ;;  %s1487_s3 = smov (%p31_p0), [#allocation3]  }
   0x8   : > { %1239 = vmatpush3.bf16.msra.mxu0 %v1361_v6  ;;  %v1370_v15 = vld [vmem:[%s1807_s1 + $0xd8] sm:$0xff]   ;;  %v1374_v19 = vld [vmem:[%s1807_s1 + $0xe0] sm:$0xff]   ;;  %v1378_v23 = vld [vmem:[%s1807_s1 + $0xe8] sm:$0xff]   ;;  %v1485_v6 = vmov 0   ;;  %s1127_s27 = sshll.u32 (%p31_p0), %s1487_s3, 4  ;;  %s1128_s27 = int_to_ptr.vmem [resolvable:$true] %s1127_s27 }
   0x9   : > { %1240 = vmatprep.subr.bf16.mxu0 %v1364_v9  ;;  %v1371_v16 = vld [vmem:[%s1807_s1 + $0x98] sm:$0xff]   ;;  %v1375_v20 = vld [vmem:[%s1807_s1 + $0xa0] sm:$0xff]   ;;  %v1379_v24 = vld [vmem:[%s1807_s1 + $0xa8] sm:$0xff]   ;;  %s1449_s28 = scalar_lea.vmem (%p31_p0), %s1128_s27, 32  ;;  %p1454_p2 = scmp.lt.s32.totalorder (%p31_p0), %s1128_s27, %s1128_s27 }
   0xa   : > { %1261 = vmatpush3.bf16.msra.mxu1 %v1363_v8  ;;  %v1380_v25 = vld [vmem:[%s1807_s1 + $0x70] sm:$0xff]   ;;  %v1384_v30 = vld [vmem:[%s1807_s1 + $0x78] sm:$0xff]   ;;  %v37_v39 = vld [vmem:[%s36_s23] sm:$0x1f]  ;;  %p1450_p1 = scmp.ne.s32.totalorder (%p31_p0), %s1128_s27, %s1449_s28  ;;  %p1455_p3 = scmp.lt.s32.totalorder (%p31_p0), %s1449_s28, %s1449_s28 }
   0xb   : > { %1262 = vmatprep.subr.bf16.mxu1 %v1366_v11  ;;  %v1381_v26 = vld [vmem:[%s1807_s1 + $0x30] sm:$0xff]   ;;  %v1385_v31 = vld [vmem:[%s1807_s1 + $0x38] sm:$0xff]   ;;  %v125_v41 = vrot.slane %v37_v39, %v124_v40  ;;  %v1389_v45 = vld [vmem:[%s1807_s1 + $0x100] sm:$0xff]   ;;  %v118_v49 = vcombine.high %v37_v39, %v37_v39 }
   0xc   : > { %1241 = vmatpush3.bf16.msra.mxu0 %v1365_v10  ;;  %v1382_v27 = vld [vmem:[%s1807_s1 + $0xf0] sm:$0xff]   ;;  %v1386_v32 = vld [vmem:[%s1807_s1 + $0xf8] sm:$0xff]   ;;  %v1390_v48 = vld [vmem:[%s1807_s1 + $0x108] sm:$0xff]   ;;  %p1456_p4 = por (%p31_p0), %p1455_p3, %p1454_p2 }
   0xd   : > { %1242 = vmatprep.subr.bf16.mxu0 %v1368_v13  ;;  %v1383_v28 = vld [vmem:[%s1807_s1 + $0xb0] sm:$0xff]   ;;  %v1388_v36 = vld [vmem:[%s1807_s1 + $0xb8] sm:$0xff]   ;;  %v133_v42 = vcombine.high %v125_v41, %v125_v41  ;;  %v140_v43 = vrot.slane %v125_v41, %v124_v40  ;;  %v132_v51 = vrot.slane %v118_v49, %v124_v40  ;;  %v1144_v8 = vld [vmem:[%s1808_s2] ss:$0 sm:$0xff] }
   0xe   : > { %1263 = vmatpush3.bf16.msra.mxu1 %v1367_v12  ;;  %v1391_v50 = vld [vmem:[%s1807_s1 + $0x110] sm:$0xff]   ;;  %v1392_v52 = vld [vmem:[%s1807_s1 + $0x118] sm:$0xff]   ;;  %v1419_v49 = vld [vmem:[%s1811_s5] sm:$0xff] (%p31_p0)   ;;  %p1457_p5 = pnand (%p31_p0), %p1456_p4, %p1450_p1 }
   0xf   : > { %1264 = vmatprep.subr.bf16.mxu1 %v1370_v15  ;;  %v154_v44 = vrot.slane %v133_v42, %v124_v40  ;;  %v155_v46 = vcombine.high %v140_v43, %v140_v43  ;;  %v147_v53 = vrot.slane %v132_v51, %v124_v40  ;;  %v1393_v54 = vld [vmem:[%s1639_s30] ss:$16 sps:$4 sm:$0xff]   ;;  %v1395_v55 = vld [vmem:[%s1639_s30 + $0x4] ss:$16 sps:$4 sm:$0xff]   ;;  %v1396_v56 = vld [vmem:[%s1639_s30 + $0x8] ss:$16 sps:$4 sm:$0xff]  }
  0x10   : > { %1243 = vmatpush3.bf16.msra.mxu0 %v1369_v14  ;;  %v1398_v57 = vld [vmem:[%s1639_s30 + $0xc] ss:$16 sps:$4 sm:$0xff]   ;;  %v1401_v58 = vld [vmem:[%s1639_s30 + $0x24] ss:$16 sps:$4 sm:$0xff]   ;;  %v1399_v60 = vld [vmem:[%s1639_s30 + $0x20] ss:$16 sps:$4 sm:$0xff]  }
  0x11   : > { %1244 = vmatprep.subr.bf16.mxu0 %v1372_v17  ;;  %413 = vmatprep.mubr.bf16.mxu0 %v154_v44  ;;  %v156_v47 = vcombine.high %v154_v44, %v154_v44  ;;  %v1404_v59 = vld [vmem:[%s1639_s30 + $0x2c] ss:$16 sps:$4 sm:$0xff]   ;;  %v1402_v61 = vld [vmem:[%s1639_s30 + $0x28] ss:$16 sps:$4 sm:$0xff]   ;;  %v1407_v62 = vld [vmem:[%s1639_s30 + $0x44] ss:$16 sps:$4 sm:$0xff]  }
  0x12   : > { %1265 = vmatpush3.bf16.msra.mxu1 %v1371_v16  ;;  %v1410_v63 = vld [vmem:[%s1639_s30 + $0x4c] ss:$16 sps:$4 sm:$0xff]   ;;  %v1405_v0 = vld [vmem:[%s1639_s30 + $0x40] ss:$16 sps:$4 sm:$0xff]   ;;  %v1408_v1 = vld [vmem:[%s1639_s30 + $0x48] ss:$16 sps:$4 sm:$0xff]  }
  0x13   : > { %1266 = vmatprep.subr.bf16.mxu1 %v1374_v19  ;;  %453 = vmatprep.mubr.bf16.mxu1 %v156_v47  ;;  %v1413_v2 = vld [vmem:[%s1639_s30 + $0x64] ss:$16 sps:$4 sm:$0xff]   ;;  %v1416_v3 = vld [vmem:[%s1639_s30 + $0x6c] ss:$16 sps:$4 sm:$0xff]   ;;  %v1411_v4 = vld [vmem:[%s1639_s30 + $0x60] ss:$16 sps:$4 sm:$0xff]  }
  0x14   : > { %1245 = vmatpush3.bf16.msra.mxu0 %v1373_v18  ;;  %v1414_v5 = vld [vmem:[%s1639_s30 + $0x68] ss:$16 sps:$4 sm:$0xff]   ;;  %v503_v44 = vld [vmem:[#allocation2] sm:$0xff] }
  0x15   : > { %1246 = vmatprep.subr.bf16.mxu0 %v1376_v21  ;;  %v1417_v47 = vld [vmem:[%s1811_s5 + $0x40] sm:$0xff] (%p31_p0)   ;;  %v1421_v51 = vld [vmem:[%s1811_s5 + $0x48] sm:$0xff] (%p31_p0)  }
  0x16   : > { %1267 = vmatpush3.bf16.msra.mxu1 %v1375_v20 }
  0x17   : > { %1268 = vmatprep.subr.bf16.mxu1 %v1378_v23 }
  0x18   : > { %1247 = vmatpush3.bf16.msra.mxu0 %v1377_v22 }
  0x19   : > { %1248 = vmatprep.subr.bf16.mxu0 %v1380_v25 }
  0x1a   : > { %1269 = vmatpush3.bf16.msra.mxu1 %v1379_v24 }
  0x1b   : > { %1270 = vmatprep.subr.bf16.mxu1 %v1382_v27  ;;  %v1486_v27 = vmov 1983009808  }
  0x1c   : > { %1249 = vmatpush3.bf16.msra.mxu0 %v1381_v26 }
  0x1d   : > { %1250 = vmatprep.subr.bf16.mxu0 %v1384_v30 }
  0x1e   : > { %1271 = vmatpush3.bf16.msra.mxu1 %v1383_v28  ;;  %v695_v28 = vunpack.c.l.s4 %v1486_v27 }
  0x1f   : > { %1272 = vmatprep.subr.bf16.mxu1 %v1386_v32 }
  0x20   : > { %1251 = vmatpush3.bf16.msra.mxu0 %v1385_v31  ;;  %v696_v29 = vunpack.c.0.s8 %v695_v28 }
  0x21   : > { %1329 = vmatprep.subr.bf16.mxu0 %v1483_v37 }
  0x22   : > { %1273 = vmatpush3.bf16.msra.mxu1 %v1388_v36  ;;  %v1677_v32 = vsub.s32 %v696_v29, %v1627_v33 }
  0x23   : > { %414 = vmatmul.mubr.bf16.vlgmr.msra.gmra.mrb[0].mxu0 %v140_v43  ;;  %606 = vmatprep.subr.bf16.mxu1 %v1395_v55  ;;  %v1425_v55 = vld [vmem:[%s1811_s5 + $0x50] sm:$0xff] (%p31_p0)  }
  0x24   : > { %1330 = vmatpush3.bf16.msra.mxu0 %v1389_v45  ;;  %1337 = vmatprep.mubr.msk.bf16.mxu0 %vm1484_vm0, %v1483_v37 }
  0x25   : > { %454 = vmatmul.mubr.bf16.vlgmr.msra.gmra.mrb[0].mxu1 %v155_v46  ;;  %1331 = vmatprep.subr.bf16.mxu0 %v1483_v37 }
  0x26   : > { %607 = vmatpush1.bf16.msra.mxu1 %v1393_v54  ;;  %638 = vmatprep.mubr.bf16.mxu1 %v1485_v6  ;;  %v1424_v54 = vld [vmem:[%s1811_s5 + $0x88] sm:$0xff] (%p31_p0)  }
  0x27   : > { %608 = vmatprep.subr.bf16.mxu1 %v1401_v58  ;;  %v1428_v58 = vld [vmem:[%s1811_s5 + $0x90] sm:$0xff] (%p31_p0)  }
  0x28   : > { %1332 = vmatpush3.bf16.msra.mxu0 %v1390_v48  ;;  %v1418_v48 = vld [vmem:[%s1811_s5 + $0xc0] sm:$0xff] (%p31_p0)  }
  0x29   : > { %1333 = vmatprep.subr.bf16.mxu0 %v1483_v37 }
  0x2a   : > { %609 = vmatpush1.bf16.msra.mxu1 %v1399_v60  ;;  %v1430_v60 = vld [vmem:[%s1811_s5 + $0xd8] sm:$0xff] (%p31_p0)  }
  0x2b   : > { %610 = vmatprep.subr.bf16.mxu1 %v1407_v62  ;;  %v1432_v62 = vld [vmem:[%s1811_s5 + $0x98] sm:$0xff] (%p31_p0)  }
  0x2c   : > { %1334 = vmatpush3.bf16.msra.mxu0 %v1391_v50  ;;  %v1420_v50 = vld [vmem:[%s1811_s5 + $0x80] sm:$0xff] (%p31_p0)  }
  0x2d   : > { %1335 = vmatprep.subr.bf16.mxu0 %v1483_v37 }
  0x2e   : > { %611 = vmatpush1.bf16.msra.mxu1 %v1405_v0  ;;  %v1434_v0 = vld [vmem:[%s1811_s5 + $0xe0] sm:$0xff] (%p31_p0)  }
  0x2f   : > { %612 = vmatprep.subr.bf16.mxu1 %v1413_v2  ;;  %v1436_v2 = vld [vmem:[%s1811_s5 + $0xa0] sm:$0xff] (%p31_p0)  }
  0x30   : > { %1336 = vmatpush3.bf16.msra.mxu0 %v1392_v52  ;;  %v1422_v52 = vld [vmem:[%s1811_s5 + $0xc8] sm:$0xff] (%p31_p0)  }
  0x31   : > { %647 = vmatprep.subr.bf16.mxu0 %v1398_v57  ;;  %v1427_v57 = vld [vmem:[%s1811_s5 + $0x10] sm:$0xff] (%p31_p0)  }
  0x32   : > { %613 = vmatpush1.bf16.msra.mxu1 %v1411_v4  ;;  %v1438_v4 = vld [vmem:[%s1811_s5 + $0xe8] sm:$0xff] (%p31_p0)  }
  0x33   : > { %1338 = vmatmul.mubr.msk.bf16.vlgmr.msra.gmra.mrb[4].mxu0 %vm377_vm1, %v147_v53  ;;  %1307 = vmatprep.subr.bf16.mxu1 (%p31_p0), %v1418_v48  ;;  %v1423_v53 = vld [vmem:[%s1811_s5 + $0x8] sm:$0xff] (%p31_p0)  }
  0x34   : > { %648 = vmatpush1.bf16.msra.mxu0 %v1396_v56  ;;  %679 = vmatprep.mubr.bf16.mxu0 %v1485_v6  ;;  %v1426_v56 = vld [vmem:[%s1811_s5 + $0xd0] sm:$0xff] (%p31_p0)   ;;  %v1440_v6 = vld [vmem:[%s1811_s5 + $0xa8] sm:$0xff] (%p31_p0)  }
  0x35   : > { %649 = vmatprep.subr.bf16.mxu0 %v1404_v59  ;;  %v1429_v59 = vld [vmem:[%s1811_s5 + $0x58] sm:$0xff] (%p31_p0)  }
  0x38   : > { %650 = vmatpush1.bf16.msra.mxu0 %v1402_v61  ;;  %v1431_v61 = vld [vmem:[%s1811_s5 + $0x18] sm:$0xff] (%p31_p0)  }
  0x39   : > { %651 = vmatprep.subr.bf16.mxu0 %v1410_v63  ;;  %v1433_v63 = vld [vmem:[%s1811_s5 + $0x60] sm:$0xff] (%p31_p0)  }
  0x3c   : > { %652 = vmatpush1.bf16.msra.mxu0 %v1408_v1  ;;  %v1435_v1 = vld [vmem:[%s1811_s5 + $0x20] sm:$0xff] (%p31_p0)  }
  0x3d   : > { %653 = vmatprep.subr.bf16.mxu0 %v1416_v3  ;;  %v1437_v3 = vld [vmem:[%s1811_s5 + $0x68] sm:$0xff] (%p31_p0)  }
  0x40   : > { %654 = vmatpush1.bf16.msra.mxu0 %v1414_v5  ;;  %v1439_v5 = vld [vmem:[%s1811_s5 + $0x28] sm:$0xff] (%p31_p0)  }
  0x41   :  { %1285 = vmatprep.subr.bf16.mxu0 (%p31_p0), %v1417_v47 }
  0xf6   : > { %v1252_v7 = vpop.f32.mrb[0].mxu0 }
  0xf7   : > { %v1253_v9 = vpop.f32.mrb[1].mxu0 }
  0xf8   : > { %v1254_v10 = vadd.f32 %v1253_v9, %v1252_v7  ;;  %v1255_v11 = vpop.f32.mrb[2].mxu0  ;;  %v1274_v12 = vpop.f32.mrb[0].mxu1  ;;  %v1441_v7 = vld [vmem:[%s1811_s5 + $0x70] sm:$0xff] (%p31_p0)  }
  0xf9   : > { %v1256_v13 = vpop.f32.mrb[3].mxu0  ;;  %v1275_v14 = vpop.f32.mrb[1].mxu1  ;;  %v1443_v9 = vld [vmem:[%s1811_s5 + $0x30] sm:$0xff] (%p31_p0)  }
  0xfa   : > { %v416_v15 = vadd.f32 %v1254_v10, %v1144_v8  ;;  %v1276_v16 = vadd.f32 %v1275_v14, %v1274_v12  ;;  %v1277_v17 = vpop.f32.mrb[2].mxu1  ;;  %v1442_v8 = vld [vmem:[%s1811_s5 + $0xf0] sm:$0xff] (%p31_p0)   ;;  %v717_v10 = vsub.s32 (%p31_p0), 0, %v1627_v33  ;;  %v721_v12 = vsub.s32 (%p31_p0), 1, %v1627_v33  ;;  %v1445_v13 = vld [vmem:[%s1811_s5 + $0x78] sm:$0xff] (%p31_p0)  }
  0xfb   : > { %v1278_v18 = vpop.f32.mrb[3].mxu1  ;;  %v1444_v11 = vld [vmem:[%s1811_s5 + $0xb0] sm:$0xff] (%p31_p0)   ;;  %v725_v14 = vsub.s32 (%p31_p0), 2, %v1627_v33  ;;  %v1447_v17 = vld [vmem:[%s1811_s5 + $0x38] sm:$0xff] (%p31_p0)  }
  0xfc   : > { %v456_v19 = vadd.f32 %v1276_v16, %v416_v15  ;;  %v1446_v15 = vld [vmem:[%s1811_s5 + $0xf8] sm:$0xff] (%p31_p0)   ;;  %v729_v16 = vsub.s32 (%p31_p0), 3, %v1627_v33 }
  0xfd   :  { %v1448_v18 = vld [vmem:[%s1811_s5 + $0xb8] sm:$0xff] (%p31_p0)  }
 0x106   : > { %v495_v20 = vpop.f32.mrb[4].mxu0 }
 0x107   : > { %v496_v21 = vadd.f32 %v495_v20, %v456_v19  ;;  %v1339_v22 = vpop.f32.mrb[5].mxu0  ;;  %v713_v19 = vld [vmem:[%s1810_s4] sm:$0xf] (%p31_p0) }
 0x108   : > { %v498_v23 = vpop.f32.mrb[6].mxu0  ;;  %v718_v20 = vrot.slane (%p31_p0), %v713_v19, %v717_v10  ;;  %v726_v22 = vrot.slane (%p31_p0), %v713_v19, %v725_v14  ;;  %v730_v33 = vrot.slane (%p31_p0), %v713_v19, %v729_v16 }
 0x109   : > { %v501_v24 = vmax.f32 %v496_v21, 0.0  ;;  %v1340_v25 = vpop.f32.mrb[7].mxu0  ;;  %v722_v21 = vrot.slane (%p31_p0), %v713_v19, %v721_v12 }
 0x10b   : > { %v502_v26 = vpack.c.bf16 %v501_v24, %v501_v24  ;;  %v731_v23 = vcombine.low (%p31_p0), %v718_v20, %v722_v21  ;;  %v732_v24 = vcombine.low (%p31_p0), %v726_v22, %v730_v33 }
 0x10d   : > { %1200 = vmatmul.mubr.msk.bf16.vlgmr.msra.gmra.mrb[4].mxu1 %vm377_vm1, %v502_v26  ;;  %1201 = vmatmul.mubr.msk.bf16.vlgmr.msra.gmra.mrb[8].mxu0 %vm377_vm1, %v502_v26  ;;  %v739_v25 = vrot.slane (%p31_p0), %v731_v23, %v1677_v32  ;;  %v746_v26 = vrot.slane (%p31_p0), %v732_v24, %v1677_v32 }
 0x10e   :  { %1286 = vmatpush3.bf16.msra.mxu0 (%p31_p0), %v1419_v49  ;;  %1308 = vmatpush3.bf16.msra.mxu1 (%p31_p0), %v1420_v50 }
 0x10f   :  { %1287 = vmatprep.subr.bf16.mxu0 (%p31_p0), %v1421_v51  ;;  %1309 = vmatprep.subr.bf16.mxu1 (%p31_p0), %v1422_v52  ;;  %v747_v28 = vcombine.low (%p31_p0), %v739_v25, %v746_v26 }
 0x112   :  { %1288 = vmatpush3.bf16.msra.mxu0 (%p31_p0), %v1423_v53  ;;  %1310 = vmatpush3.bf16.msra.mxu1 (%p31_p0), %v1424_v54 }
 0x113   :  { %1289 = vmatprep.subr.bf16.mxu0 (%p31_p0), %v1425_v55  ;;  %1311 = vmatprep.subr.bf16.mxu1 (%p31_p0), %v1426_v56 }
 0x116   :  { %1290 = vmatpush3.bf16.msra.mxu0 (%p31_p0), %v1427_v57  ;;  %1312 = vmatpush3.bf16.msra.mxu1 (%p31_p0), %v1428_v58 }
 0x117   :  { %1291 = vmatprep.subr.bf16.mxu0 (%p31_p0), %v1429_v59  ;;  %1313 = vmatprep.subr.bf16.mxu1 (%p31_p0), %v1430_v60 }
 0x11a   :  { %1292 = vmatpush3.bf16.msra.mxu0 (%p31_p0), %v1431_v61  ;;  %1314 = vmatpush3.bf16.msra.mxu1 (%p31_p0), %v1432_v62 }
 0x11b   :  { %1293 = vmatprep.subr.bf16.mxu0 (%p31_p0), %v1433_v63  ;;  %1315 = vmatprep.subr.bf16.mxu1 (%p31_p0), %v1434_v0 }
 0x11e   :  { %1294 = vmatpush3.bf16.msra.mxu0 (%p31_p0), %v1435_v1  ;;  %1316 = vmatpush3.bf16.msra.mxu1 (%p31_p0), %v1436_v2 }
 0x11f   :  { %1295 = vmatprep.subr.bf16.mxu0 (%p31_p0), %v1437_v3  ;;  %1317 = vmatprep.subr.bf16.mxu1 (%p31_p0), %v1438_v4 }
 0x122   :  { %1296 = vmatpush3.bf16.msra.mxu0 (%p31_p0), %v1439_v5  ;;  %1318 = vmatpush3.bf16.msra.mxu1 (%p31_p0), %v1440_v6 }
 0x123   :  { %1297 = vmatprep.subr.bf16.mxu0 (%p31_p0), %v1441_v7  ;;  %1319 = vmatprep.subr.bf16.mxu1 (%p31_p0), %v1442_v8 }
 0x126   :  { %1298 = vmatpush3.bf16.msra.mxu0 (%p31_p0), %v1443_v9  ;;  %1320 = vmatpush3.bf16.msra.mxu1 (%p31_p0), %v1444_v11 }
 0x127   :  { %1299 = vmatprep.subr.bf16.mxu0 (%p31_p0), %v1445_v13  ;;  %1321 = vmatprep.subr.bf16.mxu1 (%p31_p0), %v1446_v15 }
 0x12a   :  { %1300 = vmatpush3.bf16.msra.mxu0 (%p31_p0), %v1447_v17  ;;  %1322 = vmatpush3.bf16.msra.mxu1 (%p31_p0), %v1448_v18 }
 0x1e0   : > { %v640_v30 = vpop.f32.mrb[4].mxu1  ;;  %v681_v31 = vpop.f32.mrb[8].mxu0 }
 0x1e1   : > { %v642_v34 = vpop.f32.mrb[5].mxu1  ;;  %v683_v35 = vpop.f32.mrb[9].mxu0 }
 0x1e2   : > { %v692_v36 = vcombine.low %v640_v30, %v642_v34  ;;  %v693_v37 = vcombine.low %v681_v31, %v683_v35  ;;  %v644_v38 = vpop.f32.mrb[6].mxu1  ;;  %v685_v39 = vpop.f32.mrb[10].mxu0 }
 0x1e3   : > { %v645_v40 = vpop.f32.mrb[7].mxu1  ;;  %v686_v41 = vpop.f32.mrb[11].mxu0 }
 0x1e4   : > { %v700_v42 = vrot.slane %v692_v36, %v1677_v32  ;;  %v707_v43 = vrot.slane %v693_v37, %v1677_v32  ;;  %33 = sbr.rel (!%p31_p0) target bundleno = 2 (0x2), region = 57 }
 0x1e6   : > { %v708_v45 = vcombine.low %v700_v42, %v707_v43  ;;  %v1202_v43 = vld [vmem:[%s1812_s6] ss:$0 sm:$0xff] (%p31_p0) }
 0x1e8   : > { %v710_v46 = vadd.f32 %v708_v45, %v503_v44 }
 0x1ea   : > { %711 = vst [vmem:[#allocation2] sm:$0xff] %v710_v46 }
 0x1f1   :  { %v712_v27 = vld [vmem:[#allocation2] sm:$0xff] }
 0x1f2   :  { %v749_v29 = vadd.f32 %v747_v28, %v712_v27 }
 0x1f4   :  { %v750_v30 = vmax.f32 %v749_v29, 0.0 }
 0x1f6   :  { %v759_v31 = vrot.slane %v750_v30, %v1677_v32  ;;  %v752_v34 = vcombine.high %v750_v30, %v750_v30 }
 0x1f8   :  { %v767_v35 = vcombine.high %v759_v31, %v759_v31  ;;  %v766_v36 = vrot.slane %v752_v34, %v1677_v32  ;;  %v773_v37 = vpack.c.bf16 %v759_v31, %v759_v31 }
 0x1fa   :  { %v774_v38 = vpack.c.bf16 %v767_v35, %v767_v35  ;;  %v768_v39 = vcombine.high %v766_v36, %v766_v36  ;;  %v775_v40 = vpack.c.bf16 %v766_v36, %v766_v36 }
 0x1fc   :  { %1072 = vmatprep.mubr.bf16.mxu0 %v774_v38  ;;  %v776_v41 = vpack.c.bf16 %v768_v39, %v768_v39 }
 0x1fd   :  { %1073 = vmatmul.mubr.bf16.vlgmr.msra.gmra.mrb[0].mxu0 %v773_v37 }
 0x1fe   :  { %1112 = vmatprep.mubr.bf16.mxu1 %v776_v41 }
 0x1ff   :  { %1113 = vmatmul.mubr.bf16.vlgmr.msra.gmra.mrb[0].mxu1 %v775_v40 }
 0x2d0   :  { %v1301_v42 = vpop.f32.mrb[0].mxu0 }
 0x2d1   :  { %v1302_v44 = vpop.f32.mrb[1].mxu0 }
 0x2d2   :  { %v1323_v45 = vpop.f32.mrb[0].mxu1  ;;  %v1303_v46 = vadd.f32 %v1302_v44, %v1301_v42  ;;  %v1304_v47 = vpop.f32.mrb[2].mxu0 }
 0x2d3   :  { %v1324_v48 = vpop.f32.mrb[1].mxu1  ;;  %v1305_v32 = vpop.f32.mrb[3].mxu0 }
 0x2d4   :  { %v1075_v49 = vadd.f32 %v1303_v46, %v1202_v43  ;;  %v1325_v50 = vadd.f32 %v1324_v48, %v1323_v45  ;;  %v1326_v51 = vpop.f32.mrb[2].mxu1 }
 0x2d5   :  { %v1327_v52 = vpop.f32.mrb[3].mxu1 }
 0x2d6   :  { %v1115_v53 = vadd.f32 %v1325_v50, %v1075_v49 }
 0x2d8   :  { %1120 = vst [vmem:[#allocation3] sm:$0x3] %v1115_v53 }
 0x2d9   :  { %1460 = shalt.err (!%p1457_p5)
}
 0x2da   :  { %s1461_s30 = scalar_lea.hbm %s1813_s7, 32 }
 0x2db   :  { %p1462_p6 = scmp.ne.s32.totalorder %s1813_s7, %s1461_s30  ;;  %p1465_p7 = scmp.lt.u32.totalorder %s1461_s30, %s1813_s7 }
 0x2dd   :  { %p1467_p8 = pnand %p1465_p7, %p1462_p6 }
 0x2df   :  { %1470 = shalt.err (!%p1467_p8)
}
 0x2e0   :  { %1130 = dma.vmem_to_hbm [thread:$0]  %s1128_s27, 32, %s1813_s7, [#allocation4]  }
 0x2e1   :  { %1475 = dma.done.wait [#allocation4], 32  }
 0x2e2   :  { %1476 = vsyncadd [#allocation4], 4294967264 }
 0x2e3   :  { %1134 = vsyncpa [#allocation4], 1 }

</bundles_post_ra>
